<compile_context>
chip_gen: v6e
topology: v6e:2x2x1
jax: 0.10.0
libtpu: 0.0.40
codegen_flags: <defaults>
</compile_context>

<pallas_src>
import functools

import numpy as np
import jax
import jax.numpy as jnp
from jax.experimental import pallas as pl
from jax.experimental.pallas import tpu as pltpu

NUM_CLASSES = 2
IMG_H, IMG_W = 128, 128
FEAT_STRIDE = 16
FEAT_C = 512
POOL = 7
HEAD_N = 128                      # lane-dense width of the fused cls+bbox head


# ---------------------------------------------------------------------------
# Pallas kernel 1: fused  out = act((X @ W) * scale + b)     grid = (N/tn, K/tk)
#   - accumulates directly into the resident f32 output block (no scratch)
#   - W may be bf16 or int8 (dequantized to bf16 in-kernel; per-output-channel
#     scale applied in the finalize branch); f32 accumulation on the MXU.
# ---------------------------------------------------------------------------
def _linear_kernel(x_ref, w_ref, s_ref, b_ref, o_ref, *, activation):
    k = pl.program_id(1)

    @pl.when(k == 0)
    def _():
        o_ref[...] = jnp.zeros_like(o_ref)

    w = w_ref[...]
    if w_ref.dtype == jnp.int8:
        # Dequant to bf16 before the dot -> MXU sees bf16 on every generation.
        w = w.astype(jnp.bfloat16)
    o_ref[...] += jnp.dot(x_ref[...], w, preferred_element_type=jnp.float32)

    @pl.when(k == pl.num_programs(1) - 1)
    def _():
        y = o_ref[...] * s_ref[...] + b_ref[...]
        if activation == "relu":
            y = jnp.maximum(y, 0.0)
        o_ref[...] = y


def pallas_linear(x, w, b, scale=None, activation=None, tk=None, tn=None):
    """x: (M, K) f32, w: (K, N) bf16/int8, b: (N,) f32 -> (M, N) f32."""
    M, K = x.shape
    K2, N = w.shape
    assert K == K2

    if tn is None:
        tn = N if N <= 1024 else 1024
    assert N % tn == 0

    w_itemsize = np.dtype(w.dtype).itemsize
    if tk is None:
        # Size the weight block so that (2x double-buffered weight blocks +
        # the in-kernel bf16 dequant temp for int8) stays small relative to
        # v7x's 64 MiB VMEM while keeping the grid-step count low.
        budget = (7 if w_itemsize == 1 else 13) * 1024 * 1024
        tk = K
        while tk * tn * w_itemsize > budget and tk % 256 == 0:
            tk //= 2
    assert K % tk == 0 and tk % 128 == 0

    # Cast x to bf16 once here (not per grid step inside the kernel).
    x = x.astype(jnp.bfloat16)

    Mp = max(16, ((M + 15) // 16) * 16)       # bf16 sublane packing (16, 128)
    if Mp != M:
        x = jnp.pad(x, ((0, Mp - M), (0, 0)))

    b2 = jnp.asarray(b, jnp.float32).reshape(1, N)
    if scale is None:
        s2 = jnp.ones((1, N), jnp.float32)
    else:
        s2 = jnp.asarray(scale, jnp.float32).reshape(1, N)

    out = pl.pallas_call(
        functools.partial(_linear_kernel, activation=activation),
        out_shape=jax.ShapeDtypeStruct((Mp, N), jnp.float32),
        grid_spec=pltpu.PrefetchScalarGridSpec(
            num_scalar_prefetch=0,
            grid=(N // tn, K // tk),
            in_specs=[
                pl.BlockSpec((Mp, tk), lambda j, k: (0, k)),
                pl.BlockSpec((tk, tn), lambda j, k: (k, j)),
                pl.BlockSpec((1, tn), lambda j, k: (0, j)),
                pl.BlockSpec((1, tn), lambda j, k: (0, j)),
            ],
            out_specs=pl.BlockSpec((Mp, tn), lambda j, k: (0, j)),
        ),
        compiler_params=pltpu.CompilerParams(
            # N axis first and parallel -> v7x's 2 TensorCores each stream
            # half the weights (N//tn is even for fc1/fc2).
            dimension_semantics=("parallel", "arbitrary"),
            vmem_limit_bytes=48 * 1024 * 1024),
    )(x, w, s2, b2)
    return out[:M]


def quantize_int8_per_col(w):
    """Symmetric per-output-channel int8 quantization. Returns (w_q, scale)."""
    amax = jnp.max(jnp.abs(w), axis=0, keepdims=True)
    scale = jnp.maximum(amax, 1e-8) / 127.0
    w_q = jnp.clip(jnp.round(w / scale), -127.0, 127.0).astype(jnp.int8)
    return w_q, scale.astype(jnp.float32)


# ---------------------------------------------------------------------------
# Pallas kernel 2: ROI adaptive max-pool over the full feature map.
#   feature map: (fh*fw, C) resident in VMEM; per-ROI adaptive-pool bin
#   boundaries come in via scalar prefetch (SMEM); "parallel" grid over R.
#   All 49 bin maxima are written with ONE lane-dense (49, C) store per ROI.
# ---------------------------------------------------------------------------
def _roi_pool_kernel(ys_ref, ye_ref, xs_ref, xe_ref, feat_ref, out_ref, *, fw):
    r = pl.program_id(0)
    f = feat_ref[...]                                          # (fh*fw, C)
    sp = jax.lax.broadcasted_iota(jnp.int32, f.shape, 0)       # spatial row idx
    yy = sp // fw
    xx = sp % fw
    # Finite sentinel: features are post-ReLU (>= 0), so a non-empty bin
    # always wins; a degenerate/empty bin yields -1e30 instead of NaN.
    neg = jnp.float32(-1e30)

    ymasks = [(yy >= ys_ref[r, i]) & (yy < ye_ref[r, i]) for i in range(POOL)]
    xmasks = [(xx >= xs_ref[r, j]) & (xx < xe_ref[r, j]) for j in range(POOL)]

    rows = []
    for i in range(POOL):
        for j in range(POOL):
            m = ymasks[i] & xmasks[j]
            rows.append(jnp.max(jnp.where(m, f, neg), axis=0, keepdims=True))
    out_ref[0] = jnp.concatenate(rows, axis=0)                 # one (49, C) store


def pallas_roi_adaptive_max_pool(feat2d, ys, ye, xs, xe, fw):
    """feat2d: (fh*fw, C) f32; ys/ye/xs/xe: (R, POOL) int32 bin boundaries."""
    R = ys.shape[0]
    HW, C = feat2d.shape
    out = pl.pallas_call(
        functools.partial(_roi_pool_kernel, fw=fw),
        out_shape=jax.ShapeDtypeStruct((R, POOL * POOL, C), jnp.float32),
        grid_spec=pltpu.PrefetchScalarGridSpec(
            num_scalar_prefetch=4,
            grid=(R,),
            in_specs=[pl.BlockSpec((HW, C), lambda r, ys, ye, xs, xe: (0, 0))],
            out_specs=pl.BlockSpec((1, POOL * POOL, C),
                                   lambda r, ys, ye, xs, xe: (r, 0, 0)),
        ),
        compiler_params=pltpu.CompilerParams(
            dimension_semantics=("parallel",)),
    )(jnp.asarray(ys, jnp.int32), jnp.asarray(ye, jnp.int32),
      jnp.asarray(xs, jnp.int32), jnp.asarray(xe, jnp.int32), feat2d)
    return out


# ---------------------------------------------------------------------------
# Host helpers
# ---------------------------------------------------------------------------
def compute_roi_bins_host(proposals, fh, fw):
    """Mirror the PyTorch .item()/round() ROI cropping + adaptive_max_pool2d bins."""
    R = len(proposals)
    ys = np.zeros((R, POOL), np.int32)
    ye = np.zeros((R, POOL), np.int32)
    xs = np.zeros((R, POOL), np.int32)
    xe = np.zeros((R, POOL), np.int32)
    for r, bb in enumerate(proposals):
        # TODO(synk): Python round() is banker's rounding; torch.Tensor.round()
        #             rounds half away from zero (differs only for *.5 coords).
        sx = max(min(round(bb[0] / 16), fw - 1), 0)
        sy = max(min(round(bb[1] / 16), fh - 1), 0)
        ex = max(min(round(bb[2] / 16) + 1, fw), 1)
        ey = max(min(round(bb[3] / 16) + 1, fh), 1)
        h = max(ey - sy, 1)      # clamp >= 1 so no bin is ever empty
        w = max(ex - sx, 1)
        for i in range(POOL):
            ys[r, i] = sy + (i * h) // POOL
            ye[r, i] = sy + -((-(i + 1) * h) // POOL)   # ceil
            xs[r, i] = sx + (i * w) // POOL
            xe[r, i] = sx + -((-(i + 1) * w) // POOL)
    return ys, ye, xs, xe


def nms_host(boxes, threshold):
    n = boxes.shape[0]
    suppressed = np.zeros(n, dtype=bool)
    keep = []
    for i in range(n):
        if suppressed[i]:
            continue
        keep.append(i)
        x1, y1, x2, y2 = boxes[i]
        area_i = max(x2 - x1, 0.0) * max(y2 - y1, 0.0)
        for j in range(i + 1, n):
            if suppressed[j]:
                continue
            xx1 = max(x1, boxes[j, 0]); yy1 = max(y1, boxes[j, 1])
            xx2 = min(x2, boxes[j, 2]); yy2 = min(y2, boxes[j, 3])
            inter = max(xx2 - xx1, 0.0) * max(yy2 - yy1, 0.0)
            area_j = max(boxes[j, 2] - boxes[j, 0], 0.0) * \
                     max(boxes[j, 3] - boxes[j, 1], 0.0)
            union = area_i + area_j - inter
            iou = inter / union if union > 0 else 0.0
            if iou > threshold:
                suppressed[j] = True
    return np.array(keep, dtype=np.int64)


# ---------------------------------------------------------------------------
# Model (eval path)
# ---------------------------------------------------------------------------
def init_params(key):
    def linear_init(k, fan_in, fan_out):
        k1, k2 = jax.random.split(k)
        bound = 1.0 / np.sqrt(fan_in)
        w = jax.random.uniform(k1, (fan_in, fan_out), jnp.float32, -bound, bound)
        b = jax.random.uniform(k2, (fan_out,), jnp.float32, -bound, bound)
        return w, b

    keys = jax.random.split(key, 5)
    params = {}
    wp, bp = linear_init(keys[0], FEAT_STRIDE * FEAT_STRIDE * 3, FEAT_C)
    params["patch"] = (wp.astype(jnp.bfloat16), None, bp)      # bf16 weights

    # fc1 input index ordering is (pool_bin, channel) = (49, 512); since the
    # weights are randomly initialized in-script this is a benign permutation
    # of the PyTorch (channel, bin) flattening.
    w1, b1 = linear_init(keys[1], FEAT_C * POOL * POOL, 4096)
    w2, b2 = linear_init(keys[2], 4096, 4096)
    w1q, s1 = quantize_int8_per_col(w1)                        # int8 weight streaming
    w2q, s2 = quantize_int8_per_col(w2)
    params["fc1"] = (w1q, s1, b1)
    params["fc2"] = (w2q, s2, b2)

    # Fused (class, bbox-transformer) head, padded to a lane-dense width.
    w_cls, b_cls = linear_init(keys[3], 4096, NUM_CLASSES)
    w_tfm, b_tfm = linear_init(keys[4], 4096, NUM_CLASSES * 4)
    w_head = jnp.concatenate([w_cls, w_tfm], axis=1)               # (4096, 10)
    w_head = jnp.pad(w_head, ((0, 0), (0, HEAD_N - w_head.shape[1])))
    b_head = jnp.concatenate([b_cls, b_tfm])
    b_head = jnp.pad(b_head, (0, HEAD_N - b_head.shape[0]))
    params["head"] = (w_head.astype(jnp.bfloat16), None, b_head)   # bf16 weights
    return params


def backbone_features(image, params):
    """image: (1, 3, H, W) -> features (fh*fw, 512) row-major over (y, x)."""
    _, C, H, W = image.shape
    fh, fw = H // FEAT_STRIDE, W // FEAT_STRIDE
    patches = image[0].reshape(C, fh, FEAT_STRIDE, fw, FEAT_STRIDE)
    patches = jnp.transpose(patches, (1, 3, 0, 2, 4))          # (fh, fw, C, 16, 16)
    patches = patches.reshape(fh * fw, C * FEAT_STRIDE * FEAT_STRIDE)
    w, s, b = params["patch"]
    feat = pallas_linear(patches, w, b, scale=s, activation="relu")  # (fh*fw, 512)
    return feat, fh, fw


def detection_forward(feat2d, fh, fw, proposal_bboxes_host, params):
    R = len(proposal_bboxes_host)
    ys, ye, xs, xe = compute_roi_bins_host(proposal_bboxes_host, fh, fw)
    pooled = pallas_roi_adaptive_max_pool(feat2d, ys, ye, xs, xe, fw)  # (R,49,512)
    pool = pooled.reshape(R, POOL * POOL * FEAT_C)

    w1, s1, b1 = params["fc1"]
    w2, s2, b2 = params["fc2"]
    wh, sh, bh = params["head"]
    h = pallas_linear(pool, w1, b1, scale=s1, activation="relu")
    h = pallas_linear(h, w2, b2, scale=s2, activation="relu")
    head = pallas_linear(h, wh, bh, scale=sh)                    # (R, 128)
    classes = head[:, :NUM_CLASSES]
    transformers = head[:, NUM_CLASSES:NUM_CLASSES + NUM_CLASSES * 4]
    return classes, transformers


def generate_detections(proposal_bboxes, classes, transformers, img_w, img_h):
    # bbox decode + softmax in plain jnp (tiny; kernel was pure launch overhead)
    R = proposal_bboxes.shape[0]
    t = transformers.reshape(R, NUM_CLASSES, 4)
    std = jnp.array([0.1, 0.1, 0.2, 0.2], jnp.float32)
    mean = jnp.array([0.0, 0.0, 0.0, 0.0], jnp.float32)
    # Matches the reference code exactly: `transformers * std - mean`
    # (mean == 0 here; note the reference subtracts, not adds).
    t = t * std - mean
    b = jnp.broadcast_to(proposal_bboxes[:, None, :], (R, NUM_CLASSES, 4))

    w = b[..., 2] - b[..., 0]
    h = b[..., 3] - b[..., 1]
    cx = b[..., 0] + 0.5 * w
    cy = b[..., 1] + 0.5 * h
    pcx = t[..., 0] * w + cx
    pcy = t[..., 1] * h + cy
    pw = jnp.exp(t[..., 2]) * w
    ph = jnp.exp(t[..., 3]) * h
    x1 = jnp.clip(pcx - 0.5 * pw, 0.0, float(img_w))
    y1 = jnp.clip(pcy - 0.5 * ph, 0.0, float(img_h))
    x2 = jnp.clip(pcx + 0.5 * pw, 0.0, float(img_w))
    y2 = jnp.clip(pcy + 0.5 * ph, 0.0, float(img_h))
    det_boxes = jnp.stack([x1, y1, x2, y2], axis=-1)   # (R, NUM_CLASSES, 4)
    probs = jax.nn.softmax(classes, axis=1)            # (R, NUM_CLASSES)

    det_np = np.asarray(jax.device_get(det_boxes))
    probs_np = np.asarray(jax.device_get(probs))

    gen_boxes, gen_labels, gen_probs = [], [], []
    for c in range(1, NUM_CLASSES):
        cls_boxes = det_np[:, c, :]
        cls_probs = probs_np[:, c]
        order = np.argsort(-cls_probs)
        cls_boxes = cls_boxes[order]
        cls_probs = cls_probs[order]
        keep = nms_host(cls_boxes, threshold=0.3)
        gen_boxes.append(cls_boxes[keep])
        gen_labels.append(np.ones(len(keep), dtype=np.float32) * c)
        gen_probs.append(cls_probs[keep])
    return (np.concatenate(gen_boxes, 0),
            np.concatenate(gen_labels, 0),
            np.concatenate(gen_probs, 0),
            det_boxes, probs)


if __name__ == "__main__":
    key = jax.random.PRNGKey(0)
    pkey, ikey = jax.random.split(key)
    params = init_params(pkey)

    image = jax.random.normal(ikey, (3, IMG_H, IMG_W), jnp.float32)
    image = image[None]                                          # unsqueeze(dim=0)

    # fixed deterministic proposals (x1, y1, x2, y2) in image coordinates
    proposals_host = [
        [10.0, 12.0, 60.0, 70.0], [0.0, 0.0, 127.0, 127.0],
        [30.0, 30.0, 90.0, 100.0], [5.0, 50.0, 40.0, 110.0],
        [64.0, 64.0, 120.0, 120.0], [20.0, 5.0, 100.0, 40.0],
        [0.0, 64.0, 60.0, 127.0], [40.0, 10.0, 127.0, 90.0],
    ]
    proposal_bboxes = jnp.asarray(proposals_host, jnp.float32)

    feat2d, fh, fw = backbone_features(image, params)
    classes, transformers = detection_forward(feat2d, fh, fw,
                                              proposals_host, params)
    (det_bboxes, det_labels, det_probs,
     raw_boxes, raw_probs) = generate_detections(proposal_bboxes, classes,
                                                 transformers, IMG_W, IMG_H)

    jax.block_until_ready((feat2d, classes, transformers, raw_boxes, raw_probs))
    assert det_bboxes.shape[1] == 4
    assert det_labels.shape[0] == det_probs.shape[0] == det_bboxes.shape[0]
    assert np.isfinite(det_bboxes).all() and np.isfinite(det_probs).all()
    print("KERNEL_OK")
</pallas_src>

<mosaic_0001>
module attributes {stable_mosaic.version = 11 : i64} {
  func.func @_linear_kernel(%arg0: i32, %arg1: i32, %arg2: memref<64x768xbf16, #tpu.memory_space<vmem>>, %arg3: memref<768x512xbf16, #tpu.memory_space<vmem>>, %arg4: memref<1x512xf32, #tpu.memory_space<vmem>>, %arg5: memref<1x512xf32, #tpu.memory_space<vmem>>, %arg6: memref<64x512xf32, #tpu.memory_space<vmem>>) attributes {dimension_semantics = [#tpu.dimension_semantics<parallel>, #tpu.dimension_semantics<arbitrary>], iteration_bounds = array<i64: 1, 1>, scalar_prefetch = 0 : i64, scratch_operands = 0 : i64, tpu.core_type = #tpu.core_type<tc>, window_params = [{transform_indices = @transform_0, window_bounds = array<i64: 64, 768>}, {transform_indices = @transform_1, window_bounds = array<i64: 768, 512>}, {transform_indices = @transform_2, window_bounds = array<i64: 1, 512>}, {transform_indices = @transform_3, window_bounds = array<i64: 1, 512>}, {transform_indices = @transform_4, window_bounds = array<i64: 64, 512>}]} {
    %c0_i32 = arith.constant 0 : i32
    %0 = arith.cmpi eq, %arg1, %c0_i32 : i32
    %1 = arith.extui %0 : i1 to i32
    %c0_i32_0 = arith.constant 0 : i32
    %2 = arith.cmpi ne, %1, %c0_i32_0 : i32
    scf.if %2 {
      %cst_10 = arith.constant 0.000000e+00 : f32
      %12 = vector.broadcast %cst_10 : f32 to vector<64x512xf32>
      %c0_11 = arith.constant 0 : index
      %c0_12 = arith.constant 0 : index
      %13 = vector.load %arg6[%c0_11, %c0_12] : memref<64x512xf32, #tpu.memory_space<vmem>>, vector<64x512xf32>
      tpu.vector_store %arg6[%c0_11, %c0_12], %12 {strides = array<i32>} : memref<64x512xf32, #tpu.memory_space<vmem>>, vector<64x512xf32>,
    } else {
    }
    %c0 = arith.constant 0 : index
    %c0_1 = arith.constant 0 : index
    %3 = vector.load %arg3[%c0, %c0_1] : memref<768x512xbf16, #tpu.memory_space<vmem>>, vector<768x512xbf16>
    %c0_2 = arith.constant 0 : index
    %c0_3 = arith.constant 0 : index
    %4 = vector.load %arg6[%c0_2, %c0_3] : memref<64x512xf32, #tpu.memory_space<vmem>>, vector<64x512xf32>
    %c0_4 = arith.constant 0 : index
    %c0_5 = arith.constant 0 : index
    %5 = vector.load %arg2[%c0_4, %c0_5] : memref<64x768xbf16, #tpu.memory_space<vmem>>, vector<64x768xbf16>
    %cst = arith.constant dense<0.000000e+00> : vector<64x512xf32>
    %6 = tpu.matmul %5, %3, %cst {dimension_numbers = #tpu.dot_dimension_numbers<[1], [0], [0], [1], [0, 0, 1, 1], [], []>} : vector<64x768xbf16>, vector<768x512xbf16>, vector<64x512xf32> -> vector<64x512xf32>
    %7 = arith.addf %4, %6 : vector<64x512xf32>
    %c0_6 = arith.constant 0 : index
    %c0_7 = arith.constant 0 : index
    %8 = vector.load %arg6[%c0_6, %c0_7] : memref<64x512xf32, #tpu.memory_space<vmem>>, vector<64x512xf32>
    tpu.vector_store %arg6[%c0_6, %c0_7], %7 {strides = array<i32>} : memref<64x512xf32, #tpu.memory_space<vmem>>, vector<64x512xf32>,
    %c0_i32_8 = arith.constant 0 : i32
    %9 = arith.cmpi eq, %arg1, %c0_i32_8 : i32
    %10 = arith.extui %9 : i1 to i32
    %c0_i32_9 = arith.constant 0 : i32
    %11 = arith.cmpi ne, %10, %c0_i32_9 : i32
    scf.if %11 {
      %c0_10 = arith.constant 0 : index
      %c0_11 = arith.constant 0 : index
      %12 = vector.load %arg6[%c0_10, %c0_11] : memref<64x512xf32, #tpu.memory_space<vmem>>, vector<64x512xf32>
      %c0_12 = arith.constant 0 : index
      %c0_13 = arith.constant 0 : index
      %13 = vector.load %arg4[%c0_12, %c0_13] : memref<1x512xf32, #tpu.memory_space<vmem>>, vector<1x512xf32>
      %14 = vector.broadcast %13 : vector<1x512xf32> to vector<64x512xf32>
      %15 = arith.mulf %12, %14 : vector<64x512xf32>
      %c0_14 = arith.constant 0 : index
      %c0_15 = arith.constant 0 : index
      %16 = vector.load %arg5[%c0_14, %c0_15] : memref<1x512xf32, #tpu.memory_space<vmem>>, vector<1x512xf32>
      %17 = vector.broadcast %16 : vector<1x512xf32> to vector<64x512xf32>
      %18 = arith.addf %15, %17 : vector<64x512xf32>
      %cst_16 = arith.constant 0.000000e+00 : f32
      %19 = vector.broadcast %cst_16 : f32 to vector<64x512xf32>
      %20 = arith.maximumf %18, %19 : vector<64x512xf32>
      %c0_17 = arith.constant 0 : index
      %c0_18 = arith.constant 0 : index
      %21 = vector.load %arg6[%c0_17, %c0_18] : memref<64x512xf32, #tpu.memory_space<vmem>>, vector<64x512xf32>
      tpu.vector_store %arg6[%c0_17, %c0_18], %20 {strides = array<i32>} : memref<64x512xf32, #tpu.memory_space<vmem>>, vector<64x512xf32>,
    } else {
    }
    return
  }
  func.func @transform_0(%arg0: i32, %arg1: i32) -> (i32, i32) {
    %c0_i32 = arith.constant 0 : i32
    %c0_i32_0 = arith.constant 0 : i32
    return %c0_i32, %arg1 : i32, i32
  }
  func.func @transform_1(%arg0: i32, %arg1: i32) -> (i32, i32) {
    %c0_i32 = arith.constant 0 : i32
    return %arg1, %arg0 : i32, i32
  }
  func.func @transform_2(%arg0: i32, %arg1: i32) -> (i32, i32) {
    %c0_i32 = arith.constant 0 : i32
    %c0_i32_0 = arith.constant 0 : i32
    return %c0_i32, %arg0 : i32, i32
  }
  func.func @transform_3(%arg0: i32, %arg1: i32) -> (i32, i32) {
    %c0_i32 = arith.constant 0 : i32
    %c0_i32_0 = arith.constant 0 : i32
    return %c0_i32, %arg0 : i32, i32
  }
  func.func @transform_4(%arg0: i32, %arg1: i32) -> (i32, i32) {
    %c0_i32 = arith.constant 0 : i32
    %c0_i32_0 = arith.constant 0 : i32
    return %c0_i32, %arg0 : i32, i32
  }
}

</mosaic_0001>

<bundles_post_ra>
// kernel: tpu_custom_call.1
= control target key start
LH: loop header
LB: loop body
LE: loop exit
PB: predicated region body
PF: predicated region fallthrough
CT: control target
= control target key end

     0   :  { %9 = vsyncpa [#allocation3], 0  ;;  %s3125_s0 = inlined_call_operand.hbm [shape: bf16[64,768], index: 0, kind: input, shape index: {}]   ;;  %s3126_s1 = inlined_call_operand.hbm [shape: bf16[768,512], index: 1, kind: input, shape index: {}]   ;;  %s3127_s2 = inlined_call_operand.hbm [shape: f32[1,512], index: 2, kind: input, shape index: {}]   ;;  %s3128_s3 = inlined_call_operand.vmem [shape: f32[1,512], index: 3, kind: input, shape index: {}]   ;;  %s3129_s4 = inlined_call_operand.hbm [shape: f32[64,512], index: 4, kind: output, shape index: {}]  }
   0x1   :  { %10 = vsyncpa [#allocation6], 0 }
   0x2   :  { %11 = vsyncpa [#allocation4], 0  ;;  %s2785_s15 = smov [#allocation5]  }
   0x3   :  { %s29_s16 = sshll.u32 %s2785_s15, 4  ;;  %s30_s16 = int_to_ptr.vmem [resolvable:$true] %s29_s16 }
   0x4   :  { %s2707_s17 = scalar_lea.vmem %s30_s16, 24576  ;;  %p2712_p1 = scmp.lt.s32.totalorder %s30_s16, %s30_s16 }
   0x5   :  { %p2708_p0 = scmp.ne.s32.totalorder %s30_s16, %s2707_s17  ;;  %p2713_p2 = scmp.lt.s32.totalorder %s2707_s17, %s2707_s17 }
   0x7   :  { %p2714_p3 = por %p2713_p2, %p2712_p1 }
   0x9   :  { %p2715_p4 = pnand %p2714_p3, %p2708_p0 }
   0xb   :  { %2718 = shalt.err (!%p2715_p4)
}
   0xc   :  { %s2786_s18 = smov 256   ;;  %s2787_s19 = smov 16  }
   0xd   :  { %35 = dma.hbm_to_vmem [thread:$0]  %s3126_s1, 24576, %s30_s16, [#allocation6], %s2786_s18, %s2786_s18, %s2787_s19  }
   0xe   :  { %s2788_s22 = smov [#allocation2]  }
   0xf   :  { %s17_s23 = sshll.u32 %s2788_s22, 4  ;;  %s18_s23 = int_to_ptr.vmem [resolvable:$true] %s17_s23 }
  0x10   :  { %s2727_s24 = scalar_lea.vmem %s18_s23, 3072  ;;  %p2732_p6 = scmp.lt.s32.totalorder %s18_s23, %s18_s23 }
  0x11   :  { %p2728_p5 = scmp.ne.s32.totalorder %s18_s23, %s2727_s24  ;;  %p2733_p7 = scmp.lt.s32.totalorder %s2727_s24, %s2727_s24 }
  0x13   :  { %p2734_p8 = por %p2733_p7, %p2732_p6 }
  0x15   :  { %p2735_p9 = pnand %p2734_p8, %p2728_p5 }
  0x17   :  { %2738 = shalt.err (!%p2735_p9)
}
  0x18   :  { %s2789_s25 = smov 384   ;;  %s2790_s26 = smov 24  }
  0x19   :  { %23 = dma.hbm_to_vmem [thread:$0]  %s3125_s0, 3072, %s18_s23, [#allocation3], %s2789_s25, %s2789_s25, %s2790_s26  }
  0x1a   :  { %s2791_s29 = smov [#allocation7]  }
  0x1b   :  { %s42_s30 = sshll.u32 %s2791_s29, 4  ;;  %s43_s30 = int_to_ptr.vmem [resolvable:$true] %s42_s30 }
  0x1c   :  { %s2747_s1 = scalar_lea.vmem %s43_s30, 64  ;;  %p2752_p11 = scmp.lt.s32.totalorder %s43_s30, %s43_s30 }
  0x1d   :  { %p2748_p10 = scmp.ne.s32.totalorder %s43_s30, %s2747_s1  ;;  %p2753_p12 = scmp.lt.s32.totalorder %s2747_s1, %s2747_s1 }
  0x1f   :  { %p2754_p13 = por %p2753_p12, %p2752_p11 }
  0x21   :  { %p2755_p0 = pnand %p2754_p13, %p2748_p10 }
  0x23   :  { %2758 = shalt.err (!%p2755_p0)
}
  0x24   :  { %45 = dma.hbm_to_vmem [thread:$0]  %s3127_s2, 64, %s43_s30, [#allocation6]  }
  0x25   :  { %2779 = dma.done.wait [#allocation3], 3072  }
  0x26   :  { %2780 = vsyncadd [#allocation3], 4294964224 }
  0x27   :  { %2781 = dma.done.wait [#allocation6], 24640  }
  0x28   :  { %2782 = vsyncadd [#allocation6], 4294942656  ;;  %v2375_v0 = vld [vmem:[#allocation5 + $0xe4] ss:$16 sps:$4 sm:$0xff]   ;;  %v2379_v2 = vld [vmem:[#allocation5 + $0xe0] ss:$16 sps:$4 sm:$0xff]  }
  0x29   :  { %v2377_v1 = vld [vmem:[#allocation5 + $0x2e4] ss:$16 sps:$4 sm:$0xff]   ;;  %1421 = vmatprep.subr.bf16.mxu0 %v2375_v0  ;;  %v2380_v3 = vld [vmem:[#allocation5 + $0x2e0] ss:$16 sps:$4 sm:$0xff]  }
  0x2a   :  { %1494 = vmatprep.subr.bf16.mxu1 %v2377_v1  ;;  %v2381_v4 = vld [vmem:[#allocation5 + $0xc4] ss:$16 sps:$4 sm:$0xff]   ;;  %1422 = vmatpush1.bf16.msra.mxu0 %v2379_v2  ;;  %v2385_v6 = vld [vmem:[#allocation5 + $0xc0] ss:$16 sps:$4 sm:$0xff]  }
  0x2b   :  { %1495 = vmatpush1.bf16.msra.mxu1 %v2380_v3  ;;  %v2383_v5 = vld [vmem:[#allocation5 + $0x2c4] ss:$16 sps:$4 sm:$0xff]   ;;  %1423 = vmatprep.subr.bf16.mxu0 %v2381_v4  ;;  %v2386_v7 = vld [vmem:[#allocation5 + $0x2c0] ss:$16 sps:$4 sm:$0xff]   ;;  %v2482_v3 = vld [vmem:[#allocation5 + $0xec] ss:$16 sps:$4 sm:$0xff]  }
  0x2c   :  { %1496 = vmatprep.subr.bf16.mxu1 %v2383_v5  ;;  %v2387_v8 = vld [vmem:[#allocation5 + $0xa4] ss:$16 sps:$4 sm:$0xff]   ;;  %v2391_v10 = vld [vmem:[#allocation5 + $0xa0] ss:$16 sps:$4 sm:$0xff]  }
  0x2d   :  { %v2389_v9 = vld [vmem:[#allocation5 + $0x2a4] ss:$16 sps:$4 sm:$0xff]   ;;  %v2392_v11 = vld [vmem:[#allocation5 + $0x2a0] ss:$16 sps:$4 sm:$0xff]  }
  0x2e   :  { %1424 = vmatpush1.bf16.msra.mxu0 %v2385_v6  ;;  %v2393_v12 = vld [vmem:[#allocation5 + $0x84] ss:$16 sps:$4 sm:$0xff]   ;;  %v2397_v14 = vld [vmem:[#allocation5 + $0x80] ss:$16 sps:$4 sm:$0xff]  }
  0x2f   :  { %1497 = vmatpush1.bf16.msra.mxu1 %v2386_v7  ;;  %1425 = vmatprep.subr.bf16.mxu0 %v2387_v8  ;;  %v2395_v13 = vld [vmem:[#allocation5 + $0x284] ss:$16 sps:$4 sm:$0xff]   ;;  %v2398_v15 = vld [vmem:[#allocation5 + $0x280] ss:$16 sps:$4 sm:$0xff]   ;;  %v2480_v7 = vld [vmem:[#allocation5 + $0xe8] ss:$16 sps:$4 sm:$0xff]  }
  0x30   :  { %1498 = vmatprep.subr.bf16.mxu1 %v2389_v9  ;;  %v2399_v16 = vld [vmem:[#allocation5 + $0x64] ss:$16 sps:$4 sm:$0xff]   ;;  %v2403_v18 = vld [vmem:[#allocation5 + $0x60] ss:$16 sps:$4 sm:$0xff]   ;;  %v2488_v9 = vld [vmem:[#allocation5 + $0xcc] ss:$16 sps:$4 sm:$0xff]  }
  0x31   :  { %v2401_v17 = vld [vmem:[#allocation5 + $0x264] ss:$16 sps:$4 sm:$0xff]   ;;  %v2404_v19 = vld [vmem:[#allocation5 + $0x260] ss:$16 sps:$4 sm:$0xff]  }
  0x32   :  { %1426 = vmatpush1.bf16.msra.mxu0 %v2391_v10  ;;  %v2405_v20 = vld [vmem:[#allocation5 + $0x44] ss:$16 sps:$4 sm:$0xff]   ;;  %v2409_v22 = vld [vmem:[#allocation5 + $0x40] ss:$16 sps:$4 sm:$0xff]  }
  0x33   :  { %1499 = vmatpush1.bf16.msra.mxu1 %v2392_v11  ;;  %1427 = vmatprep.subr.bf16.mxu0 %v2393_v12  ;;  %v2407_v21 = vld [vmem:[#allocation5 + $0x244] ss:$16 sps:$4 sm:$0xff]   ;;  %v2410_v23 = vld [vmem:[#allocation5 + $0x240] ss:$16 sps:$4 sm:$0xff]   ;;  %v2486_v11 = vld [vmem:[#allocation5 + $0xc8] ss:$16 sps:$4 sm:$0xff]  }
  0x34   :  { %1500 = vmatprep.subr.bf16.mxu1 %v2395_v13  ;;  %v2411_v24 = vld [vmem:[#allocation5 + $0x24] ss:$16 sps:$4 sm:$0xff]   ;;  %v2415_v26 = vld [vmem:[#allocation5 + $0x20] ss:$16 sps:$4 sm:$0xff]   ;;  %v2494_v13 = vld [vmem:[#allocation5 + $0xac] ss:$16 sps:$4 sm:$0xff]  }
  0x35   :  { %v2413_v25 = vld [vmem:[#allocation5 + $0x224] ss:$16 sps:$4 sm:$0xff]   ;;  %v2416_v27 = vld [vmem:[#allocation5 + $0x220] ss:$16 sps:$4 sm:$0xff]  }
  0x36   :  { %1428 = vmatpush1.bf16.msra.mxu0 %v2397_v14  ;;  %v2417_v28 = vld [vmem:[#allocation5 + $0x4] ss:$16 sps:$4 sm:$0xff]   ;;  %v2421_v30 = vld [vmem:[#allocation5] ss:$16 sps:$4 sm:$0xff]  }
  0x37   :  { %1501 = vmatpush1.bf16.msra.mxu1 %v2398_v15  ;;  %1429 = vmatprep.subr.bf16.mxu0 %v2399_v16  ;;  %v2419_v29 = vld [vmem:[#allocation5 + $0x204] ss:$16 sps:$4 sm:$0xff]   ;;  %v2422_v31 = vld [vmem:[#allocation5 + $0x200] ss:$16 sps:$4 sm:$0xff]   ;;  %v2492_v15 = vld [vmem:[#allocation5 + $0xa8] ss:$16 sps:$4 sm:$0xff]  }
  0x38   :  { %1502 = vmatprep.subr.bf16.mxu1 %v2401_v17  ;;  %v2423_v32 = vld [vmem:[#allocation5 + $0x1e4] ss:$16 sps:$4 sm:$0xff]   ;;  %v2427_v34 = vld [vmem:[#allocation5 + $0x1e0] ss:$16 sps:$4 sm:$0xff]  }
  0x39   :  { %v2425_v33 = vld [vmem:[#allocation5 + $0x3e4] ss:$16 sps:$4 sm:$0xff]   ;;  %v2428_v35 = vld [vmem:[#allocation5 + $0x3e0] ss:$16 sps:$4 sm:$0xff]  }
  0x3a   :  { %1430 = vmatpush1.bf16.msra.mxu0 %v2403_v18  ;;  %v2429_v36 = vld [vmem:[#allocation5 + $0x1c4] ss:$16 sps:$4 sm:$0xff]   ;;  %v2433_v38 = vld [vmem:[#allocation5 + $0x1c0] ss:$16 sps:$4 sm:$0xff]  }
  0x3b   :  { %1503 = vmatpush1.bf16.msra.mxu1 %v2404_v19  ;;  %1431 = vmatprep.subr.bf16.mxu0 %v2405_v20  ;;  %v2431_v37 = vld [vmem:[#allocation5 + $0x3c4] ss:$16 sps:$4 sm:$0xff]   ;;  %v2434_v39 = vld [vmem:[#allocation5 + $0x3c0] ss:$16 sps:$4 sm:$0xff]  }
  0x3c   :  { %1504 = vmatprep.subr.bf16.mxu1 %v2407_v21  ;;  %v2435_v40 = vld [vmem:[#allocation5 + $0x1a4] ss:$16 sps:$4 sm:$0xff]   ;;  %v2439_v42 = vld [vmem:[#allocation5 + $0x1a0] ss:$16 sps:$4 sm:$0xff]   ;;  %v2500_v21 = vld [vmem:[#allocation5 + $0x8c] ss:$16 sps:$4 sm:$0xff]  }
  0x3d   :  { %v2437_v41 = vld [vmem:[#allocation5 + $0x3a4] ss:$16 sps:$4 sm:$0xff]   ;;  %v2440_v43 = vld [vmem:[#allocation5 + $0x3a0] ss:$16 sps:$4 sm:$0xff]  }
  0x3e   :  { %1432 = vmatpush1.bf16.msra.mxu0 %v2409_v22  ;;  %v2441_v44 = vld [vmem:[#allocation5 + $0x184] ss:$16 sps:$4 sm:$0xff]   ;;  %v2445_v46 = vld [vmem:[#allocation5 + $0x180] ss:$16 sps:$4 sm:$0xff]  }
  0x3f   :  { %1505 = vmatpush1.bf16.msra.mxu1 %v2410_v23  ;;  %1433 = vmatprep.subr.bf16.mxu0 %v2411_v24  ;;  %v2443_v45 = vld [vmem:[#allocation5 + $0x384] ss:$16 sps:$4 sm:$0xff]   ;;  %v2446_v47 = vld [vmem:[#allocation5 + $0x380] ss:$16 sps:$4 sm:$0xff]   ;;  %v2498_v23 = vld [vmem:[#allocation5 + $0x88] ss:$16 sps:$4 sm:$0xff]  }
  0x40   :  { %1506 = vmatprep.subr.bf16.mxu1 %v2413_v25  ;;  %v2447_v48 = vld [vmem:[#allocation5 + $0x164] ss:$16 sps:$4 sm:$0xff]   ;;  %v2451_v52 = vld [vmem:[#allocation5 + $0x160] ss:$16 sps:$4 sm:$0xff]   ;;  %v2506_v25 = vld [vmem:[#allocation5 + $0x6c] ss:$16 sps:$4 sm:$0xff]  }
  0x41   :  { %v2829_v49 = vld [vmem:[#allocation2 + $0x4] ss:$24 sps:$4 sm:$0xff]   ;;  %v2452_v53 = vld [vmem:[#allocation5 + $0x360] ss:$16 sps:$4 sm:$0xff]   ;;  %v2841_v16 = vld [vmem:[#allocation2 + $0x34] ss:$24 sps:$4 sm:$0xff]  }
  0x42   :  { %1434 = vmatpush1.bf16.msra.mxu0 %v2415_v26  ;;  %v2449_v50 = vld [vmem:[#allocation5 + $0x364] ss:$16 sps:$4 sm:$0xff]   ;;  %1453 = vmatprep.mubr.bf16.mxu0 %v2829_v49  ;;  %v2457_v56 = vld [vmem:[#allocation5 + $0x140] ss:$16 sps:$4 sm:$0xff]  }
  0x43   :  { %1507 = vmatpush1.bf16.msra.mxu1 %v2416_v27  ;;  %1435 = vmatprep.subr.bf16.mxu0 %v2417_v28  ;;  %v2831_v51 = vld [vmem:[#allocation2 + $0xc] ss:$24 sps:$4 sm:$0xff]   ;;  %v2458_v57 = vld [vmem:[#allocation5 + $0x340] ss:$16 sps:$4 sm:$0xff]   ;;  %v2843_v17 = vld [vmem:[#allocation2 + $0x3c] ss:$24 sps:$4 sm:$0xff]  }
  0x44   :  { %1508 = vmatprep.subr.bf16.mxu1 %v2419_v29  ;;  %1526 = vmatprep.mubr.bf16.mxu1 %v2831_v51  ;;  %v2453_v54 = vld [vmem:[#allocation5 + $0x144] ss:$16 sps:$4 sm:$0xff]   ;;  %v2463_v60 = vld [vmem:[#allocation5 + $0x120] ss:$16 sps:$4 sm:$0xff]   ;;  %v2504_v27 = vld [vmem:[#allocation5 + $0x68] ss:$16 sps:$4 sm:$0xff]  }
  0x45   :  { %v2455_v55 = vld [vmem:[#allocation5 + $0x344] ss:$16 sps:$4 sm:$0xff]   ;;  %v2464_v61 = vld [vmem:[#allocation5 + $0x320] ss:$16 sps:$4 sm:$0xff]  }
  0x46   :  { %1436 = vmatpush1.bf16.msra.mxu0 %v2421_v30  ;;  %v2459_v58 = vld [vmem:[#allocation5 + $0x124] ss:$16 sps:$4 sm:$0xff]   ;;  %v2469_v0 = vld [vmem:[#allocation5 + $0x100] ss:$16 sps:$4 sm:$0xff]  }
  0x47   :  { %1509 = vmatpush1.bf16.msra.mxu1 %v2422_v31  ;;  %1437 = vmatprep.subr.bf16.mxu0 %v2423_v32  ;;  %v2461_v59 = vld [vmem:[#allocation5 + $0x324] ss:$16 sps:$4 sm:$0xff]   ;;  %v2470_v1 = vld [vmem:[#allocation5 + $0x300] ss:$16 sps:$4 sm:$0xff]  }
  0x48   :  { %1510 = vmatprep.subr.bf16.mxu1 %v2425_v33  ;;  %v2465_v62 = vld [vmem:[#allocation5 + $0x104] ss:$16 sps:$4 sm:$0xff]   ;;  %v2835_v4 = vld [vmem:[#allocation2] ss:$24 sps:$4 sm:$0xff]   ;;  %v2845_v18 = vld [vmem:[#allocation2 + $0x30] ss:$24 sps:$4 sm:$0xff]  }
  0x49   :  { %v2467_v63 = vld [vmem:[#allocation5 + $0x304] ss:$16 sps:$4 sm:$0xff]   ;;  %v2837_v5 = vld [vmem:[#allocation2 + $0x8] ss:$24 sps:$4 sm:$0xff]   ;;  %v2847_v19 = vld [vmem:[#allocation2 + $0x38] ss:$24 sps:$4 sm:$0xff]  }
  0x4a   :  { %1438 = vmatpush2.bf16.msra.mxu0 %v2427_v34  ;;  %v2479_v2 = vld [vmem:[#allocation5 + $0x4e4] ss:$16 sps:$4 sm:$0xff]   ;;  %v2477_v6 = vld [vmem:[#allocation5 + $0x4e0] ss:$16 sps:$4 sm:$0xff]   ;;  %v2512_v33 = vld [vmem:[#allocation5 + $0x4c] ss:$16 sps:$4 sm:$0xff]  }
  0x4b   :  { %1511 = vmatpush2.bf16.msra.mxu1 %v2428_v35  ;;  %1439 = vmatprep.subr.bf16.mxu0 %v2429_v36  ;;  %v2485_v8 = vld [vmem:[#allocation5 + $0x4c4] ss:$16 sps:$4 sm:$0xff]   ;;  %v2483_v10 = vld [vmem:[#allocation5 + $0x4c0] ss:$16 sps:$4 sm:$0xff]   ;;  %v2510_v35 = vld [vmem:[#allocation5 + $0x48] ss:$16 sps:$4 sm:$0xff]  }
  0x4c   :  { %1512 = vmatprep.subr.bf16.mxu1 %v2431_v37  ;;  %v2491_v12 = vld [vmem:[#allocation5 + $0x4a4] ss:$16 sps:$4 sm:$0xff]   ;;  %v2489_v14 = vld [vmem:[#allocation5 + $0x4a0] ss:$16 sps:$4 sm:$0xff]   ;;  %v2518_v37 = vld [vmem:[#allocation5 + $0x2c] ss:$16 sps:$4 sm:$0xff]  }
  0x4d   :  { %v2497_v20 = vld [vmem:[#allocation5 + $0x484] ss:$16 sps:$4 sm:$0xff]   ;;  %v2495_v22 = vld [vmem:[#allocation5 + $0x480] ss:$16 sps:$4 sm:$0xff]  }
  0x4e   :  { %1440 = vmatpush2.bf16.msra.mxu0 %v2433_v38  ;;  %v2503_v24 = vld [vmem:[#allocation5 + $0x464] ss:$16 sps:$4 sm:$0xff]   ;;  %v2501_v26 = vld [vmem:[#allocation5 + $0x460] ss:$16 sps:$4 sm:$0xff]  }
  0x4f   :  { %1513 = vmatpush2.bf16.msra.mxu1 %v2434_v39  ;;  %1441 = vmatprep.subr.bf16.mxu0 %v2435_v40  ;;  %v2853_v28 = vld [vmem:[#allocation2 + $0x64] ss:$24 sps:$4 sm:$0xff]   ;;  %v2857_v30 = vld [vmem:[#allocation2 + $0x60] ss:$24 sps:$4 sm:$0xff]   ;;  %v2865_v40 = vld [vmem:[#allocation2 + $0x94] ss:$24 sps:$4 sm:$0xff]  }
  0x50   :  { %1514 = vmatprep.subr.bf16.mxu1 %v2437_v41  ;;  %v2855_v29 = vld [vmem:[#allocation2 + $0x6c] ss:$24 sps:$4 sm:$0xff]   ;;  %v2859_v31 = vld [vmem:[#allocation2 + $0x68] ss:$24 sps:$4 sm:$0xff]   ;;  %v2867_v41 = vld [vmem:[#allocation2 + $0x9c] ss:$24 sps:$4 sm:$0xff]  }
  0x51   :  { %v2509_v32 = vld [vmem:[#allocation5 + $0x444] ss:$16 sps:$4 sm:$0xff]   ;;  %v2507_v34 = vld [vmem:[#allocation5 + $0x440] ss:$16 sps:$4 sm:$0xff]   ;;  %v2516_v39 = vld [vmem:[#allocation5 + $0x28] ss:$16 sps:$4 sm:$0xff]  }
  0x52   :  { %1442 = vmatpush2.bf16.msra.mxu0 %v2439_v42  ;;  %v2515_v36 = vld [vmem:[#allocation5 + $0x424] ss:$16 sps:$4 sm:$0xff]   ;;  %v2513_v38 = vld [vmem:[#allocation5 + $0x420] ss:$16 sps:$4 sm:$0xff]  }
  0x53   :  { %1515 = vmatpush2.bf16.msra.mxu1 %v2440_v43  ;;  %1443 = vmatprep.subr.bf16.mxu0 %v2441_v44  ;;  %v2869_v42 = vld [vmem:[#allocation2 + $0x90] ss:$24 sps:$4 sm:$0xff]   ;;  %v2521_v44 = vld [vmem:[#allocation5 + $0x404] ss:$16 sps:$4 sm:$0xff]  }
  0x54   :  { %1516 = vmatprep.subr.bf16.mxu1 %v2443_v45  ;;  %v2871_v43 = vld [vmem:[#allocation2 + $0x98] ss:$24 sps:$4 sm:$0xff]   ;;  %v2524_v45 = vld [vmem:[#allocation5 + $0xc] ss:$16 sps:$4 sm:$0xff]  }
  0x56   :  { %1444 = vmatpush2.bf16.msra.mxu0 %v2445_v46  ;;  %v2519_v46 = vld [vmem:[#allocation5 + $0x400] ss:$16 sps:$4 sm:$0xff]  }
  0x57   :  { %1517 = vmatpush2.bf16.msra.mxu1 %v2446_v47  ;;  %1445 = vmatprep.subr.bf16.mxu0 %v2447_v48  ;;  %v2522_v47 = vld [vmem:[#allocation5 + $0x8] ss:$16 sps:$4 sm:$0xff]   ;;  %v2527_v48 = vld [vmem:[#allocation5 + $0x5e4] ss:$16 sps:$4 sm:$0xff]  }
  0x58   :  { %1518 = vmatprep.subr.bf16.mxu1 %v2449_v50  ;;  %v2530_v50 = vld [vmem:[#allocation5 + $0x1ec] ss:$16 sps:$4 sm:$0xff]  }
  0x5a   :  { %1446 = vmatpush2.bf16.msra.mxu0 %v2451_v52  ;;  %v2525_v52 = vld [vmem:[#allocation5 + $0x5e0] ss:$16 sps:$4 sm:$0xff]  }
  0x5b   :  { %1519 = vmatpush2.bf16.msra.mxu1 %v2452_v53  ;;  %1447 = vmatprep.subr.bf16.mxu0 %v2453_v54  ;;  %v2528_v53 = vld [vmem:[#allocation5 + $0x1e8] ss:$16 sps:$4 sm:$0xff]   ;;  %v2539_v54 = vld [vmem:[#allocation5 + $0x5c4] ss:$16 sps:$4 sm:$0xff]  }
  0x5c   :  { %1520 = vmatprep.subr.bf16.mxu1 %v2455_v55  ;;  %v2542_v55 = vld [vmem:[#allocation5 + $0x1cc] ss:$16 sps:$4 sm:$0xff]  }
  0x5e   :  { %1448 = vmatpush2.bf16.msra.mxu0 %v2457_v56  ;;  %v2878_v56 = vld [vmem:[#allocation2 + $0x14] ss:$24 sps:$4 sm:$0xff]  }
  0x5f   :  { %1521 = vmatpush2.bf16.msra.mxu1 %v2458_v57  ;;  %1449 = vmatprep.subr.bf16.mxu0 %v2459_v58  ;;  %v2537_v57 = vld [vmem:[#allocation5 + $0x5c0] ss:$16 sps:$4 sm:$0xff]   ;;  %v2540_v58 = vld [vmem:[#allocation5 + $0x1c8] ss:$16 sps:$4 sm:$0xff]  }
  0x60   :  { %1522 = vmatprep.subr.bf16.mxu1 %v2461_v59  ;;  %v2545_v59 = vld [vmem:[#allocation5 + $0x5a4] ss:$16 sps:$4 sm:$0xff]  }
  0x62   :  { %1450 = vmatpush2.bf16.msra.mxu0 %v2463_v60  ;;  %v2548_v60 = vld [vmem:[#allocation5 + $0x1ac] ss:$16 sps:$4 sm:$0xff]  }
  0x63   :  { %1523 = vmatpush2.bf16.msra.mxu1 %v2464_v61  ;;  %1451 = vmatprep.subr.bf16.mxu0 %v2465_v62  ;;  %v2546_v61 = vld [vmem:[#allocation5 + $0x1a8] ss:$16 sps:$4 sm:$0xff]   ;;  %v2557_v62 = vld [vmem:[#allocation5 + $0x584] ss:$16 sps:$4 sm:$0xff]  }
  0x64   :  { %1524 = vmatprep.subr.bf16.mxu1 %v2467_v63  ;;  %v2560_v63 = vld [vmem:[#allocation5 + $0x18c] ss:$16 sps:$4 sm:$0xff]  }
  0x66   :  { %1452 = vmatpush2.bf16.msra.mxu0 %v2469_v0  ;;  %v2555_v0 = vld [vmem:[#allocation5 + $0x580] ss:$16 sps:$4 sm:$0xff]  }
  0x67   :  { %1525 = vmatpush2.bf16.msra.mxu1 %v2470_v1  ;;  %1567 = vmatprep.subr.bf16.mxu0 %v2479_v2  ;;  %v2558_v1 = vld [vmem:[#allocation5 + $0x188] ss:$16 sps:$4 sm:$0xff]   ;;  %v2563_v2 = vld [vmem:[#allocation5 + $0x564] ss:$16 sps:$4 sm:$0xff]  }
  0x68   :  { %1640 = vmatprep.subr.bf16.mxu1 %v2482_v3  ;;  %v2566_v3 = vld [vmem:[#allocation5 + $0x16c] ss:$16 sps:$4 sm:$0xff]  }
  0x69   :  { %1454 = vmatmul.mubr.bf16.vlgmr.msra.gmra.mxu0 %v2835_v4 }
  0x6a   :  { %1527 = vmatmul.mubr.bf16.vlgmr.msra.gmra.mxu1 %v2837_v5  ;;  %1568 = vmatpush1.bf16.msra.mxu0 %v2477_v6  ;;  %v2561_v6 = vld [vmem:[#allocation5 + $0x560] ss:$16 sps:$4 sm:$0xff]  }
  0x6b   :  { %1641 = vmatpush1.bf16.msra.mxu1 %v2480_v7  ;;  %1569 = vmatprep.subr.bf16.mxu0 %v2485_v8  ;;  %v2564_v7 = vld [vmem:[#allocation5 + $0x168] ss:$16 sps:$4 sm:$0xff]   ;;  %v2575_v8 = vld [vmem:[#allocation5 + $0x544] ss:$16 sps:$4 sm:$0xff]  }
  0x6c   :  { %1642 = vmatprep.subr.bf16.mxu1 %v2488_v9  ;;  %1463 = vmatprep.mubr.bf16.mxu0 %v2841_v16  ;;  %v2578_v9 = vld [vmem:[#allocation5 + $0x14c] ss:$16 sps:$4 sm:$0xff]  }
  0x6d   :  { %1536 = vmatprep.mubr.bf16.mxu1 %v2843_v17 }
  0x6e   :  { %1570 = vmatpush1.bf16.msra.mxu0 %v2483_v10  ;;  %v2573_v10 = vld [vmem:[#allocation5 + $0x540] ss:$16 sps:$4 sm:$0xff]  }
  0x6f   :  { %1643 = vmatpush1.bf16.msra.mxu1 %v2486_v11  ;;  %1571 = vmatprep.subr.bf16.mxu0 %v2491_v12  ;;  %v2576_v11 = vld [vmem:[#allocation5 + $0x148] ss:$16 sps:$4 sm:$0xff]   ;;  %v2581_v12 = vld [vmem:[#allocation5 + $0x524] ss:$16 sps:$4 sm:$0xff]  }
  0x70   :  { %1644 = vmatprep.subr.bf16.mxu1 %v2494_v13  ;;  %v2584_v13 = vld [vmem:[#allocation5 + $0x12c] ss:$16 sps:$4 sm:$0xff]  }
  0x71   :  { %1464 = vmatmul.mubr.bf16.gmra.mxu0 %v2845_v18 }
  0x72   :  { %1537 = vmatmul.mubr.bf16.gmra.mxu1 %v2847_v19  ;;  %1572 = vmatpush1.bf16.msra.mxu0 %v2489_v14  ;;  %v2579_v14 = vld [vmem:[#allocation5 + $0x520] ss:$16 sps:$4 sm:$0xff]  }
  0x73   :  { %1645 = vmatpush1.bf16.msra.mxu1 %v2492_v15  ;;  %1573 = vmatprep.subr.bf16.mxu0 %v2497_v20  ;;  %v2582_v15 = vld [vmem:[#allocation5 + $0x128] ss:$16 sps:$4 sm:$0xff]   ;;  %v2587_v20 = vld [vmem:[#allocation5 + $0x504] ss:$16 sps:$4 sm:$0xff]  }
  0x74   :  { %1646 = vmatprep.subr.bf16.mxu1 %v2500_v21  ;;  %1473 = vmatprep.mubr.bf16.mxu0 %v2853_v28  ;;  %v2590_v21 = vld [vmem:[#allocation5 + $0x10c] ss:$16 sps:$4 sm:$0xff]  }
  0x75   :  { %1546 = vmatprep.mubr.bf16.mxu1 %v2855_v29 }
  0x76   :  { %1574 = vmatpush1.bf16.msra.mxu0 %v2495_v22  ;;  %v2585_v22 = vld [vmem:[#allocation5 + $0x500] ss:$16 sps:$4 sm:$0xff]  }
  0x77   :  { %1647 = vmatpush1.bf16.msra.mxu1 %v2498_v23  ;;  %1575 = vmatprep.subr.bf16.mxu0 %v2503_v24  ;;  %v2588_v23 = vld [vmem:[#allocation5 + $0x108] ss:$16 sps:$4 sm:$0xff]   ;;  %v2596_v24 = vld [vmem:[#allocation5 + $0x2ec] ss:$16 sps:$4 sm:$0xff]  }
  0x78   :  { %1648 = vmatprep.subr.bf16.mxu1 %v2506_v25  ;;  %v2599_v25 = vld [vmem:[#allocation5 + $0x4ec] ss:$16 sps:$4 sm:$0xff]  }
  0x79   :  { %1474 = vmatmul.mubr.bf16.gmra.mxu0 %v2857_v30 }
  0x7a   :  { %1547 = vmatmul.mubr.bf16.gmra.mxu1 %v2859_v31  ;;  %1576 = vmatpush1.bf16.msra.mxu0 %v2501_v26  ;;  %v2881_v26 = vld [vmem:[#allocation2 + $0x10] ss:$24 sps:$4 sm:$0xff]  }
  0x7b   :  { %1649 = vmatpush1.bf16.msra.mxu1 %v2504_v27  ;;  %1577 = vmatprep.subr.bf16.mxu0 %v2509_v32  ;;  %v2594_v27 = vld [vmem:[#allocation5 + $0x2e8] ss:$16 sps:$4 sm:$0xff]  }
  0x7c   :  { %1650 = vmatprep.subr.bf16.mxu1 %v2512_v33  ;;  %1483 = vmatprep.mubr.bf16.mxu0 %v2865_v40  ;;  %v2597_v32 = vld [vmem:[#allocation5 + $0x4e8] ss:$16 sps:$4 sm:$0xff]   ;;  %v2602_v33 = vld [vmem:[#allocation5 + $0x2cc] ss:$16 sps:$4 sm:$0xff]  }
  0x7d   :  { %1556 = vmatprep.mubr.bf16.mxu1 %v2867_v41 }
  0x7e   :  { %1578 = vmatpush1.bf16.msra.mxu0 %v2507_v34  ;;  %v2605_v34 = vld [vmem:[#allocation5 + $0x4cc] ss:$16 sps:$4 sm:$0xff]  }
  0x7f   :  { %1651 = vmatpush1.bf16.msra.mxu1 %v2510_v35  ;;  %1579 = vmatprep.subr.bf16.mxu0 %v2515_v36  ;;  %v2883_v35 = vld [vmem:[#allocation2 + $0x44] ss:$24 sps:$4 sm:$0xff]   ;;  %v2600_v36 = vld [vmem:[#allocation5 + $0x2c8] ss:$16 sps:$4 sm:$0xff]  }
  0x80   :  { %1652 = vmatprep.subr.bf16.mxu1 %v2518_v37  ;;  %v2603_v37 = vld [vmem:[#allocation5 + $0x4c8] ss:$16 sps:$4 sm:$0xff]  }
  0x81   :  { %1484 = vmatmul.mubr.bf16.gmra.mxu0 %v2869_v42 }
  0x82   :  { %1557 = vmatmul.mubr.bf16.gmra.mxu1 %v2871_v43  ;;  %1580 = vmatpush1.bf16.msra.mxu0 %v2513_v38  ;;  %v2611_v38 = vld [vmem:[#allocation5 + $0x2ac] ss:$16 sps:$4 sm:$0xff]  }
  0x83   :  { %1653 = vmatpush1.bf16.msra.mxu1 %v2516_v39  ;;  %1581 = vmatprep.subr.bf16.mxu0 %v2521_v44  ;;  %v2614_v39 = vld [vmem:[#allocation5 + $0x4ac] ss:$16 sps:$4 sm:$0xff]   ;;  %v2888_v44 = vld [vmem:[#allocation2 + $0x40] ss:$24 sps:$4 sm:$0xff]  }
  0x84   :  { %1654 = vmatprep.subr.bf16.mxu1 %v2524_v45  ;;  %1672 = vmatprep.mubr.bf16.mxu1 %v2829_v49  ;;  %v2543_v49 = vld [vmem:[#allocation5 + $0x5a0] ss:$16 sps:$4 sm:$0xff]   ;;  %v2609_v45 = vld [vmem:[#allocation5 + $0x2a8] ss:$16 sps:$4 sm:$0xff]  }
  0x85   :  { %1599 = vmatprep.mubr.bf16.mxu0 %v2878_v56 }
  0x86   :  { %1582 = vmatpush1.bf16.msra.mxu0 %v2519_v46  ;;  %v2612_v46 = vld [vmem:[#allocation5 + $0x4a8] ss:$16 sps:$4 sm:$0xff]  }
  0x87   :  { %1655 = vmatpush1.bf16.msra.mxu1 %v2522_v47  ;;  %1583 = vmatprep.subr.bf16.mxu0 %v2527_v48  ;;  %v2617_v47 = vld [vmem:[#allocation5 + $0x28c] ss:$16 sps:$4 sm:$0xff]  }
  0x88   :  { %1656 = vmatprep.subr.bf16.mxu1 %v2530_v50  ;;  %v2891_v48 = vld [vmem:[#allocation2 + $0x74] ss:$24 sps:$4 sm:$0xff]   ;;  %v2615_v50 = vld [vmem:[#allocation5 + $0x288] ss:$16 sps:$4 sm:$0xff]  }
  0x8a   :  { %1584 = vmatpush2.bf16.msra.mxu0 %v2525_v52  ;;  %v2618_v52 = vld [vmem:[#allocation5 + $0x488] ss:$16 sps:$4 sm:$0xff]  }
  0x8b   :  { %1657 = vmatpush2.bf16.msra.mxu1 %v2528_v53  ;;  %1585 = vmatprep.subr.bf16.mxu0 %v2539_v54  ;;  %v2626_v53 = vld [vmem:[#allocation5 + $0x26c] ss:$16 sps:$4 sm:$0xff]   ;;  %v2897_v54 = vld [vmem:[#allocation2 + $0x70] ss:$24 sps:$4 sm:$0xff]  }
  0x8c   :  { %1658 = vmatprep.subr.bf16.mxu1 %v2542_v55  ;;  %v2624_v55 = vld [vmem:[#allocation5 + $0x268] ss:$16 sps:$4 sm:$0xff]  }
  0x8e   :  { %1586 = vmatpush2.bf16.msra.mxu0 %v2537_v57  ;;  %v2627_v57 = vld [vmem:[#allocation5 + $0x468] ss:$16 sps:$4 sm:$0xff]  }
  0x8f   :  { %1659 = vmatpush2.bf16.msra.mxu1 %v2540_v58  ;;  %1587 = vmatprep.subr.bf16.mxu0 %v2545_v59  ;;  %v2632_v58 = vld [vmem:[#allocation5 + $0x24c] ss:$16 sps:$4 sm:$0xff]  }
  0x90   :  { %1660 = vmatprep.subr.bf16.mxu1 %v2548_v60  ;;  %v2899_v59 = vld [vmem:[#allocation2 + $0xa4] ss:$24 sps:$4 sm:$0xff]   ;;  %v2630_v60 = vld [vmem:[#allocation5 + $0x248] ss:$16 sps:$4 sm:$0xff]  }
  0x92   :  { %1588 = vmatpush2.bf16.msra.mxu0 %v2543_v49  ;;  %v2641_v49 = vld [vmem:[#allocation5 + $0x22c] ss:$16 sps:$4 sm:$0xff]  }
  0x93   :  { %1661 = vmatpush2.bf16.msra.mxu1 %v2546_v61  ;;  %1589 = vmatprep.subr.bf16.mxu0 %v2557_v62  ;;  %v2644_v61 = vld [vmem:[#allocation5 + $0x42c] ss:$16 sps:$4 sm:$0xff]   ;;  %v2905_v62 = vld [vmem:[#allocation2 + $0xa0] ss:$24 sps:$4 sm:$0xff]  }
  0x94   :  { %1662 = vmatprep.subr.bf16.mxu1 %v2560_v63  ;;  %v2639_v63 = vld [vmem:[#allocation5 + $0x228] ss:$16 sps:$4 sm:$0xff]  }
  0x96   :  { %1590 = vmatpush2.bf16.msra.mxu0 %v2555_v0  ;;  %v2642_v0 = vld [vmem:[#allocation5 + $0x428] ss:$16 sps:$4 sm:$0xff]  }
  0x97   :  { %1663 = vmatpush2.bf16.msra.mxu1 %v2558_v1  ;;  %1591 = vmatprep.subr.bf16.mxu0 %v2563_v2  ;;  %v2650_v1 = vld [vmem:[#allocation5 + $0x40c] ss:$16 sps:$4 sm:$0xff]   ;;  %v2645_v2 = vld [vmem:[#allocation5 + $0x208] ss:$16 sps:$4 sm:$0xff]  }
  0x98   :  { %1664 = vmatprep.subr.bf16.mxu1 %v2566_v3  ;;  %v2648_v3 = vld [vmem:[#allocation5 + $0x408] ss:$16 sps:$4 sm:$0xff]  }
  0x9a   :  { %1592 = vmatpush2.bf16.msra.mxu0 %v2561_v6  ;;  %v2656_v6 = vld [vmem:[#allocation5 + $0x5ec] ss:$16 sps:$4 sm:$0xff]  }
  0x9b   :  { %1665 = vmatpush2.bf16.msra.mxu1 %v2564_v7  ;;  %1593 = vmatprep.subr.bf16.mxu0 %v2575_v8  ;;  %v2651_v7 = vld [vmem:[#allocation5 + $0x3e8] ss:$16 sps:$4 sm:$0xff]  }
  0x9c   :  { %1666 = vmatprep.subr.bf16.mxu1 %v2578_v9  ;;  %v2654_v8 = vld [vmem:[#allocation5 + $0x5e8] ss:$16 sps:$4 sm:$0xff]   ;;  %v2659_v9 = vld [vmem:[#allocation5 + $0x3cc] ss:$16 sps:$4 sm:$0xff]  }
  0x9e   :  { %1594 = vmatpush2.bf16.msra.mxu0 %v2573_v10  ;;  %v2657_v10 = vld [vmem:[#allocation5 + $0x3c8] ss:$16 sps:$4 sm:$0xff]  }
  0x9f   :  { %1667 = vmatpush2.bf16.msra.mxu1 %v2576_v11  ;;  %1595 = vmatprep.subr.bf16.mxu0 %v2581_v12  ;;  %v2660_v11 = vld [vmem:[#allocation5 + $0x5c8] ss:$16 sps:$4 sm:$0xff]   ;;  %v2665_v12 = vld [vmem:[#allocation5 + $0x3ac] ss:$16 sps:$4 sm:$0xff]  }
  0xa0   :  { %1668 = vmatprep.subr.bf16.mxu1 %v2584_v13  ;;  %v2668_v13 = vld [vmem:[#allocation5 + $0x5ac] ss:$16 sps:$4 sm:$0xff]  }
  0xa2   :  { %1596 = vmatpush2.bf16.msra.mxu0 %v2579_v14  ;;  %v2671_v14 = vld [vmem:[#allocation5 + $0x38c] ss:$16 sps:$4 sm:$0xff]  }
  0xa3   :  { %1669 = vmatpush2.bf16.msra.mxu1 %v2582_v15  ;;  %1597 = vmatprep.subr.bf16.mxu0 %v2587_v20  ;;  %v2674_v15 = vld [vmem:[#allocation5 + $0x58c] ss:$16 sps:$4 sm:$0xff]   ;;  %v2669_v20 = vld [vmem:[#allocation5 + $0x388] ss:$16 sps:$4 sm:$0xff]  }
  0xa4   :  { %1670 = vmatprep.subr.bf16.mxu1 %v2590_v21  ;;  %v2672_v21 = vld [vmem:[#allocation5 + $0x588] ss:$16 sps:$4 sm:$0xff]  }
  0xa6   :  { %1598 = vmatpush2.bf16.msra.mxu0 %v2585_v22  ;;  %v2677_v22 = vld [vmem:[#allocation5 + $0x36c] ss:$16 sps:$4 sm:$0xff]  }
  0xa7   :  { %1671 = vmatpush2.bf16.msra.mxu1 %v2588_v23  ;;  %1713 = vmatprep.subr.bf16.mxu0 %v2596_v24  ;;  %v2680_v23 = vld [vmem:[#allocation5 + $0x56c] ss:$16 sps:$4 sm:$0xff]   ;;  %v2675_v24 = vld [vmem:[#allocation5 + $0x368] ss:$16 sps:$4 sm:$0xff]  }
  0xa8   :  { %1786 = vmatprep.subr.bf16.mxu1 %v2599_v25  ;;  %v2678_v25 = vld [vmem:[#allocation5 + $0x568] ss:$16 sps:$4 sm:$0xff]  }
  0xa9   :  { %1600 = vmatmul.mubr.bf16.vlgmr.msra.gmra.mxu0 %v2881_v26 }
  0xaa   :  { %1673 = vmatmul.mubr.bf16.vlgmr.msra.gmra.mxu1 %v2835_v4  ;;  %1714 = vmatpush1.bf16.msra.mxu0 %v2594_v27  ;;  %v2620_v4 = vld [vmem:[#allocation5 + $0x48c] ss:$16 sps:$4 sm:$0xff]  }
  0xab   :  { %1787 = vmatpush1.bf16.msra.mxu1 %v2597_v32  ;;  %1715 = vmatprep.subr.bf16.mxu0 %v2602_v33  ;;  %v2683_v27 = vld [vmem:[#allocation5 + $0x34c] ss:$16 sps:$4 sm:$0xff]   ;;  %v2681_v33 = vld [vmem:[#allocation5 + $0x348] ss:$16 sps:$4 sm:$0xff]  }
  0xac   :  { %1788 = vmatprep.subr.bf16.mxu1 %v2605_v34  ;;  %1609 = vmatprep.mubr.bf16.mxu0 %v2883_v35  ;;  %v2686_v32 = vld [vmem:[#allocation5 + $0x54c] ss:$16 sps:$4 sm:$0xff]   ;;  %v2684_v34 = vld [vmem:[#allocation5 + $0x548] ss:$16 sps:$4 sm:$0xff]  }
  0xad   :  { %1682 = vmatprep.mubr.bf16.mxu1 %v2841_v16  ;;  %v2629_v16 = vld [vmem:[#allocation5 + $0x46c] ss:$16 sps:$4 sm:$0xff]  }
  0xae   :  { %1716 = vmatpush1.bf16.msra.mxu0 %v2600_v36  ;;  %v2689_v36 = vld [vmem:[#allocation5 + $0x32c] ss:$16 sps:$4 sm:$0xff]  }
  0xaf   :  { %1789 = vmatpush1.bf16.msra.mxu1 %v2603_v37  ;;  %1717 = vmatprep.subr.bf16.mxu0 %v2611_v38  ;;  %v2692_v37 = vld [vmem:[#allocation5 + $0x52c] ss:$16 sps:$4 sm:$0xff]   ;;  %v2687_v38 = vld [vmem:[#allocation5 + $0x328] ss:$16 sps:$4 sm:$0xff]  }
  0xb0   :  { %1790 = vmatprep.subr.bf16.mxu1 %v2614_v39  ;;  %v2690_v39 = vld [vmem:[#allocation5 + $0x528] ss:$16 sps:$4 sm:$0xff]  }
  0xb1   :  { %1610 = vmatmul.mubr.bf16.gmra.mxu0 %v2888_v44 }
  0xb2   :  { %1683 = vmatmul.mubr.bf16.gmra.mxu1 %v2845_v18  ;;  %1718 = vmatpush1.bf16.msra.mxu0 %v2609_v45  ;;  %v2635_v18 = vld [vmem:[#allocation5 + $0x44c] ss:$16 sps:$4 sm:$0xff]  }
  0xb3   :  { %1791 = vmatpush1.bf16.msra.mxu1 %v2612_v46  ;;  %1719 = vmatprep.subr.bf16.mxu0 %v2617_v47  ;;  %v2695_v45 = vld [vmem:[#allocation5 + $0x30c] ss:$16 sps:$4 sm:$0xff]   ;;  %v2693_v47 = vld [vmem:[#allocation5 + $0x308] ss:$16 sps:$4 sm:$0xff]  }
  0xb4   :  { %1792 = vmatprep.subr.bf16.mxu1 %v2620_v4  ;;  %1619 = vmatprep.mubr.bf16.mxu0 %v2891_v48  ;;  %v2698_v46 = vld [vmem:[#allocation5 + $0x50c] ss:$16 sps:$4 sm:$0xff]   ;;  %v2696_v4 = vld [vmem:[#allocation5 + $0x508] ss:$16 sps:$4 sm:$0xff]  }
  0xb5   :  { %1692 = vmatprep.mubr.bf16.mxu1 %v2853_v28  ;;  %v2633_v28 = vld [vmem:[#allocation5 + $0x448] ss:$16 sps:$4 sm:$0xff]  }
  0xb6   :  { %1720 = vmatpush1.bf16.msra.mxu0 %v2615_v50 }
  0xb7   :  { %1793 = vmatpush1.bf16.msra.mxu1 %v2618_v52  ;;  %1721 = vmatprep.subr.bf16.mxu0 %v2626_v53 }
  0xb8   :  { %1794 = vmatprep.subr.bf16.mxu1 %v2629_v16 }
  0xb9   :  { %1620 = vmatmul.mubr.bf16.gmra.mxu0 %v2897_v54 }
  0xba   :  { %1693 = vmatmul.mubr.bf16.gmra.mxu1 %v2857_v30  ;;  %1722 = vmatpush1.bf16.msra.mxu0 %v2624_v55  ;;  %v2647_v30 = vld [vmem:[#allocation5 + $0x20c] ss:$16 sps:$4 sm:$0xff]  }
  0xbb   :  { %1795 = vmatpush1.bf16.msra.mxu1 %v2627_v57  ;;  %1723 = vmatprep.subr.bf16.mxu0 %v2632_v58 }
  0xbc   :  { %1796 = vmatprep.subr.bf16.mxu1 %v2635_v18  ;;  %1629 = vmatprep.mubr.bf16.mxu0 %v2899_v59 }
  0xbd   :  { %1702 = vmatprep.mubr.bf16.mxu1 %v2865_v40  ;;  %v2653_v40 = vld [vmem:[#allocation5 + $0x3ec] ss:$16 sps:$4 sm:$0xff]  }
  0xbe   :  { %1724 = vmatpush1.bf16.msra.mxu0 %v2630_v60 }
  0xbf   :  { %1797 = vmatpush1.bf16.msra.mxu1 %v2633_v28  ;;  %1725 = vmatprep.subr.bf16.mxu0 %v2641_v49 }
  0xc0   :  { %1798 = vmatprep.subr.bf16.mxu1 %v2644_v61 }
  0xc1   :  { %1630 = vmatmul.mubr.bf16.gmra.mxu0 %v2905_v62 }
  0xc2   :  { %1703 = vmatmul.mubr.bf16.gmra.mxu1 %v2869_v42  ;;  %1726 = vmatpush1.bf16.msra.mxu0 %v2639_v63  ;;  %v2662_v42 = vld [vmem:[#allocation5 + $0x5cc] ss:$16 sps:$4 sm:$0xff]  }
  0xc3   :  { %1799 = vmatpush1.bf16.msra.mxu1 %v2642_v0  ;;  %1727 = vmatprep.subr.bf16.mxu0 %v2647_v30 }
  0xc4   :  { %1800 = vmatprep.subr.bf16.mxu1 %v2650_v1  ;;  %1745 = vmatprep.mubr.bf16.mxu0 %v2831_v51  ;;  %v2663_v51 = vld [vmem:[#allocation5 + $0x3a8] ss:$16 sps:$4 sm:$0xff]  }
  0xc5   :  { %1818 = vmatprep.mubr.bf16.mxu1 %v2878_v56  ;;  %v2666_v56 = vld [vmem:[#allocation5 + $0x5a8] ss:$16 sps:$4 sm:$0xff]  }
  0xc6   :  { %1728 = vmatpush1.bf16.msra.mxu0 %v2645_v2 }
  0xc7   :  { %1801 = vmatpush1.bf16.msra.mxu1 %v2648_v3  ;;  %1729 = vmatprep.subr.bf16.mxu0 %v2653_v40 }
  0xc8   :  { %1802 = vmatprep.subr.bf16.mxu1 %v2656_v6 }
  0xca   :  { %1730 = vmatpush2.bf16.msra.mxu0 %v2651_v7  ;;  %v2958_v7 = vld [vmem:[#allocation7] sm:$0xf] }
  0xcb   :  { %1803 = vmatpush2.bf16.msra.mxu1 %v2654_v8  ;;  %1731 = vmatprep.subr.bf16.mxu0 %v2659_v9  ;;  %v2963_v9 = vld [vmem:[%s3128_s3] sm:$0xf]  ;;  %s2792_s3 = smov [#allocation8]  }
  0xcc   :  { %1804 = vmatprep.subr.bf16.mxu1 %v2662_v42  ;;  %s2135_s7 = sshll.u32 %s2792_s3, 4  ;;  %s2136_s7 = int_to_ptr.vmem [resolvable:$true] %s2135_s7 }
  0xcd   :  { %s2759_s8 = scalar_lea.vmem %s2136_s7, 4096  ;;  %p2764_p2 = scmp.lt.s32.totalorder %s2136_s7, %s2136_s7 }
  0xce   :  { %1732 = vmatpush2.bf16.msra.mxu0 %v2657_v10  ;;  %p2760_p1 = scmp.ne.s32.totalorder %s2136_s7, %s2759_s8  ;;  %p2765_p3 = scmp.lt.s32.totalorder %s2759_s8, %s2759_s8 }
  0xcf   :  { %1805 = vmatpush2.bf16.msra.mxu1 %v2660_v11  ;;  %1733 = vmatprep.subr.bf16.mxu0 %v2665_v12 }
  0xd0   :  { %1806 = vmatprep.subr.bf16.mxu1 %v2668_v13  ;;  %p2766_p4 = por %p2765_p3, %p2764_p2 }
  0xd2   :  { %1734 = vmatpush2.bf16.msra.mxu0 %v2663_v51  ;;  %p2767_p5 = pnand %p2766_p4, %p2760_p1 }
  0xd3   :  { %1807 = vmatpush2.bf16.msra.mxu1 %v2666_v56  ;;  %1735 = vmatprep.subr.bf16.mxu0 %v2671_v14 }
  0xd4   :  { %1808 = vmatprep.subr.bf16.mxu1 %v2674_v15 }
  0xd6   :  { %1736 = vmatpush2.bf16.msra.mxu0 %v2669_v20 }
  0xd7   :  { %1809 = vmatpush2.bf16.msra.mxu1 %v2672_v21  ;;  %1737 = vmatprep.subr.bf16.mxu0 %v2677_v22 }
  0xd8   :  { %1810 = vmatprep.subr.bf16.mxu1 %v2680_v23 }
  0xda   :  { %1738 = vmatpush2.bf16.msra.mxu0 %v2675_v24 }
  0xdb   :  { %1811 = vmatpush2.bf16.msra.mxu1 %v2678_v25  ;;  %1739 = vmatprep.subr.bf16.mxu0 %v2683_v27 }
  0xdc   :  { %1812 = vmatprep.subr.bf16.mxu1 %v2686_v32 }
  0xde   :  { %1740 = vmatpush2.bf16.msra.mxu0 %v2681_v33 }
  0xdf   :  { %1813 = vmatpush2.bf16.msra.mxu1 %v2684_v34  ;;  %1741 = vmatprep.subr.bf16.mxu0 %v2689_v36 }
  0xe0   :  { %1814 = vmatprep.subr.bf16.mxu1 %v2692_v37 }
  0xe2   :  { %1742 = vmatpush2.bf16.msra.mxu0 %v2687_v38 }
  0xe3   :  { %1815 = vmatpush2.bf16.msra.mxu1 %v2690_v39  ;;  %1743 = vmatprep.subr.bf16.mxu0 %v2695_v45 }
  0xe4   :  { %1816 = vmatprep.subr.bf16.mxu1 %v2698_v46 }
  0xe6   :  { %1744 = vmatpush2.bf16.msra.mxu0 %v2693_v47 }
  0xe7   :  { %1817 = vmatpush2.bf16.msra.mxu1 %v2696_v4 }
  0xe9   :  { %1746 = vmatmul.mubr.bf16.vlgmr.msra.gmra.mxu0 %v2837_v5 }
  0xea   :  { %1819 = vmatmul.mubr.bf16.vlgmr.msra.gmra.mxu1 %v2881_v26  ;;  %1755 = vmatprep.mubr.bf16.mxu0 %v2843_v17 }
  0xeb   :  { %1828 = vmatprep.mubr.bf16.mxu1 %v2883_v35 }
  0xf1   :  { %1756 = vmatmul.mubr.bf16.gmra.mxu0 %v2847_v19 }
  0xf2   :  { %1829 = vmatmul.mubr.bf16.gmra.mxu1 %v2888_v44  ;;  %1765 = vmatprep.mubr.bf16.mxu0 %v2855_v29 }
  0xf3   :  { %1838 = vmatprep.mubr.bf16.mxu1 %v2891_v48 }
  0xf9   :  { %1766 = vmatmul.mubr.bf16.gmra.mxu0 %v2859_v31 }
  0xfa   :  { %1839 = vmatmul.mubr.bf16.gmra.mxu1 %v2897_v54  ;;  %1775 = vmatprep.mubr.bf16.mxu0 %v2867_v41 }
  0xfb   :  { %1848 = vmatprep.mubr.bf16.mxu1 %v2899_v59 }
 0x101   :  { %1776 = vmatmul.mubr.bf16.gmra.mxu0 %v2871_v43 }
 0x102   :  { %1849 = vmatmul.mubr.bf16.gmra.mxu1 %v2905_v62  ;;  %v1960_v62 = vlaneseq }
 0x104   :  { %v2947_v30 = vshrl.u32 %v1960_v62, 7 }
 0x106   :  { %v1962_v3 = vsub.s32 0, %v2947_v30  ;;  %v1966_v42 = vsub.s32 1, %v2947_v30 }
 0x108   :  { %v2967_v13 = vrot.slane %v2958_v7, %v1962_v3  ;;  %v2972_v56 = vrot.slane %v2963_v9, %v1962_v3  ;;  %v2975_v21 = vrot.slane %v2958_v7, %v1966_v42  ;;  %v2980_v23 = vrot.slane %v2963_v9, %v1966_v42 }
 0x129   :  { %v1455_v5 = vpop.f32.mrf.mxu0 }
 0x12a   :  { %v1528_v17 = vpop.f32.mrf.mxu1 }
 0x12b   :  { %v1457_v19 = vpop.f32.mrf.mxu0  ;;  %v1529_v8 = vadd.f32 %v1528_v17, %v1455_v5 }
 0x12c   :  { %v1530_v26 = vpop.f32.mrf.mxu1 }
 0x12d   :  { %v1459_v35 = vpop.f32.mrf.mxu0  ;;  %v1531_v11 = vadd.f32 %v1530_v26, %v1457_v19 }
 0x12e   :  { %v1532_v29 = vpop.f32.mrf.mxu1 }
 0x12f   :  { %v1461_v44 = vpop.f32.mrf.mxu0  ;;  %v1533_v15 = vadd.f32 %v1532_v29, %v1459_v35 }
 0x130   :  { %v1534_v50 = vpop.f32.mrf.mxu1 }
 0x131   :  { %v1465_v48 = vpop.f32.mrf.mxu0  ;;  %v1535_v25 = vadd.f32 %v1534_v50, %v1461_v44 }
 0x132   :  { %v1538_v31 = vpop.f32.mrf.mxu1 }
 0x133   :  { %v1467_v52 = vpop.f32.mrf.mxu0  ;;  %v1539_v38 = vadd.f32 %v1538_v31, %v1465_v48 }
 0x134   :  { %v1540_v53 = vpop.f32.mrf.mxu1 }
 0x135   :  { %v1469_v16 = vpop.f32.mrf.mxu0  ;;  %v1541_v39 = vadd.f32 %v1540_v53, %v1467_v52 }
 0x136   :  { %v1542_v41 = vpop.f32.mrf.mxu1 }
 0x137   :  { %v1471_v54 = vpop.f32.mrf.mxu0  ;;  %v1543_v17 = vadd.f32 %v1542_v41, %v1469_v16 }
 0x138   :  { %v1544_v55 = vpop.f32.mrf.mxu1 }
 0x139   :  { %v2925_v57 = vpop.f32.mrf.mxu0  ;;  %v1545_v48 = vadd.f32 %v1544_v55, %v1471_v54 }
 0x13a   :  { %v2927_v43 = vpop.f32.mrf.mxu1 }
 0x13b   :  { %v2929_v58 = vpop.f32.mrf.mxu0  ;;  %v1549_v16 = vadd.f32 %v2927_v43, %v2925_v57 }
 0x13c   :  { %v2931_v18 = vpop.f32.mrf.mxu1 }
 0x13d   :  { %v2933_v59 = vpop.f32.mrf.mxu0  ;;  %v1551_v57 = vadd.f32 %v2931_v18, %v2929_v58 }
 0x13e   :  { %v2935_v60 = vpop.f32.mrf.mxu1 }
 0x13f   :  { %v2937_v28 = vpop.f32.mrf.mxu0  ;;  %v1553_v43 = vadd.f32 %v2935_v60, %v2933_v59 }
 0x140   :  { %v2939_v49 = vpop.f32.mrf.mxu1 }
 0x141   :  { %v2941_v61 = vpop.f32.mrf.mxu0 }
 0x142   :  { %v2943_v63 = vpop.f32.mrf.mxu1 }
 0x143   :  { %v2945_v0 = vpop.f32.mrf.mxu0 }
 0x144   :  { %v2949_v1 = vpop.f32.mrf.mxu1 }
 0x145   :  { %v2951_v2 = vpop.f32.mrf.mxu0 }
 0x146   :  { %v2954_v40 = vpop.f32.mrf.mxu1 }
 0x147   :  { %v2956_v6 = vpop.f32.mrf.mxu0 }
 0x148   :  { %v2969_v51 = vpop.f32.mrf.mxu1 }
 0x169   :  { %v1601_v10 = vpop.f32.mrf.mxu0 }
 0x16a   :  { %v1602_v12 = vadd.f32 %v1601_v10, %v1529_v8  ;;  %v2977_v22 = vpop.f32.mrf.mxu1 }
 0x16b   :  { %v1603_v14 = vpop.f32.mrf.mxu0 }
 0x16c   :  { %v1604_v20 = vadd.f32 %v1603_v14, %v1531_v11  ;;  %v1980_v27 = vmul.f32 %v2967_v13, %v1602_v12  ;;  %v2985_v45 = vpop.f32.mrf.mxu1 }
 0x16d   :  { %v1605_v24 = vpop.f32.mrf.mxu0 }
 0x16e   :  { %v1606_v32 = vadd.f32 %v1605_v24, %v1533_v15  ;;  %v2034_v34 = vadd.f32 %v2972_v56, %v1980_v27  ;;  %v1981_v36 = vmul.f32 %v2975_v21, %v1604_v20  ;;  %v2991_v31 = vpop.f32.mrf.mxu1 }
 0x16f   :  { %v1607_v33 = vpop.f32.mrf.mxu0 }
 0x170   :  { %v1608_v37 = vadd.f32 %v1607_v33, %v1535_v25  ;;  %v2066_v47 = vmax.f32 %v2034_v34, 0.0  ;;  %v2035_v4 = vadd.f32 %v2980_v23, %v1981_v36  ;;  %v1984_v5 = vmul.f32 %v2967_v13, %v1606_v32  ;;  %v2998_v54 = vpop.f32.mrf.mxu1 }
 0x171   :  { %v1611_v46 = vpop.f32.mrf.mxu0  ;;  %v1555_v36 = vadd.f32 %v2939_v49, %v2937_v28 }
 0x172   :  { %v1612_v19 = vadd.f32 %v1611_v46, %v1539_v38  ;;  %2098 = vst [vmem:[#allocation8] sm:$0xff] %v2066_v47  ;;  %v2067_v35 = vmax.f32 %v2035_v4, 0.0  ;;  %v2038_v29 = vadd.f32 %v2972_v56, %v1984_v5  ;;  %v1985_v44 = vmul.f32 %v2975_v21, %v1608_v37  ;;  %v3007_v27 = vpop.f32.mrf.mxu1 }
 0x173   :  { %v1613_v26 = vpop.f32.mrf.mxu0  ;;  %v1561_v5 = vadd.f32 %v2949_v1, %v2945_v0  ;;  %v1563_v0 = vadd.f32 %v2954_v40, %v2951_v2  ;;  %v1565_v1 = vadd.f32 %v2969_v51, %v2956_v6 }
 0x174   :  { %v1614_v50 = vadd.f32 %v1613_v26, %v1541_v39  ;;  %2099 = vst [vmem:[#allocation8 + $0x8] sm:$0xff] %v2067_v35  ;;  %v2070_v53 = vmax.f32 %v2038_v29, 0.0  ;;  %v2039_v62 = vadd.f32 %v2980_v23, %v1985_v44  ;;  %v1988_v41 = vmul.f32 %v2967_v13, %v1612_v19  ;;  %v3017_v47 = vpop.f32.mrf.mxu1 }
 0x175   :  { %v1615_v52 = vpop.f32.mrf.mxu0  ;;  %v1559_v39 = vadd.f32 %v2943_v63, %v2941_v61 }
 0x176   :  { %v1616_v3 = vadd.f32 %v1615_v52, %v1543_v17  ;;  %2102 = vst [vmem:[#allocation8 + $0x20] sm:$0xff] %v2070_v53  ;;  %v2071_v42 = vmax.f32 %v2039_v62, 0.0  ;;  %v1989_v10 = vmul.f32 %v2975_v21, %v1614_v50  ;;  %v2042_v55 = vadd.f32 %v2972_v56, %v1988_v41  ;;  %v3025_v44 = vpop.f32.mrf.mxu1 }
 0x177   :  { %v1617_v8 = vpop.f32.mrf.mxu0 }
 0x178   :  { %v1618_v11 = vadd.f32 %v1617_v8, %v1545_v48  ;;  %2103 = vst [vmem:[#allocation8 + $0x28] sm:$0xff] %v2071_v42  ;;  %v2043_v14 = vadd.f32 %v2980_v23, %v1989_v10  ;;  %v1992_v15 = vmul.f32 %v2967_v13, %v1616_v3  ;;  %v2074_v24 = vmax.f32 %v2042_v55, 0.0  ;;  %v3035_v10 = vpop.f32.mrf.mxu1 }
 0x179   :  { %v1621_v12 = vpop.f32.mrf.mxu0 }
 0x17a   :  { %v1622_v20 = vadd.f32 %v1621_v12, %v1549_v16  ;;  %v2075_v32 = vmax.f32 %v2043_v14, 0.0  ;;  %v2046_v33 = vadd.f32 %v2972_v56, %v1992_v15  ;;  %v1993_v34 = vmul.f32 %v2975_v21, %v1618_v11  ;;  %2106 = vst [vmem:[#allocation8 + $0x40] sm:$0xff] %v2074_v24  ;;  %v3041_v14 = vpop.f32.mrf.mxu1 }
 0x17b   :  { %v1623_v25 = vpop.f32.mrf.mxu0 }
 0x17c   :  { %v1624_v37 = vadd.f32 %v1623_v25, %v1551_v57  ;;  %2107 = vst [vmem:[#allocation8 + $0x48] sm:$0xff] %v2075_v32  ;;  %v2078_v58 = vmax.f32 %v2046_v33, 0.0  ;;  %v2047_v18 = vadd.f32 %v2980_v23, %v1993_v34  ;;  %v1996_v59 = vmul.f32 %v2967_v13, %v1622_v20  ;;  %v3046_v25 = vpop.f32.mrf.mxu1 }
 0x17d   :  { %v1625_v38 = vpop.f32.mrf.mxu0 }
 0x17e   :  { %v1626_v60 = vadd.f32 %v1625_v38, %v1553_v43  ;;  %2110 = vst [vmem:[#allocation8 + $0x60] sm:$0xff] %v2078_v58  ;;  %v2079_v4 = vmax.f32 %v2047_v18, 0.0  ;;  %v2050_v28 = vadd.f32 %v2972_v56, %v1996_v59  ;;  %v1997_v17 = vmul.f32 %v2975_v21, %v1624_v37  ;;  %v3048_v33 = vpop.f32.mrf.mxu1 }
 0x17f   :  { %v1627_v46 = vpop.f32.mrf.mxu0  ;;  %v1974_v18 = vsub.s32 3, %v2947_v30 }
 0x180   :  { %v1628_v49 = vadd.f32 %v1627_v46, %v1555_v36  ;;  %2111 = vst [vmem:[#allocation8 + $0x68] sm:$0xff] %v2079_v4  ;;  %v2082_v26 = vmax.f32 %v2050_v28, 0.0  ;;  %v2000_v35 = vmul.f32 %v2967_v13, %v1626_v60  ;;  %v2051_v61 = vadd.f32 %v2980_v23, %v1997_v17 }
 0x181   :  { %v1631_v19 = vpop.f32.mrf.mxu0 }
 0x182   :  { %v1632_v29 = vadd.f32 %v1631_v19, %v1559_v39  ;;  %2114 = vst [vmem:[#allocation8 + $0x80] sm:$0xff] %v2082_v26  ;;  %v2054_v50 = vadd.f32 %v2972_v56, %v2000_v35  ;;  %v2001_v48 = vmul.f32 %v2975_v21, %v1628_v49  ;;  %v2083_v53 = vmax.f32 %v2051_v61, 0.0 }
 0x183   :  { %v1633_v63 = vpop.f32.mrf.mxu0  ;;  %v3071_v19 = vrot.slane %v2958_v7, %v1974_v18 }
 0x184   :  { %v1634_v52 = vadd.f32 %v1633_v63, %v1561_v5  ;;  %v2086_v3 = vmax.f32 %v2054_v50, 0.0  ;;  %v2055_v16 = vadd.f32 %v2980_v23, %v2001_v48  ;;  %v2004_v41 = vmul.f32 %v2967_v13, %v1632_v29  ;;  %2115 = vst [vmem:[#allocation8 + $0x88] sm:$0xff] %v2083_v53 }
 0x185   :  { %v1635_v62 = vpop.f32.mrf.mxu0 }
 0x186   :  { %v1636_v8 = vadd.f32 %v1635_v62, %v1563_v0  ;;  %2118 = vst [vmem:[#allocation8 + $0xa0] sm:$0xff] %v2086_v3  ;;  %v2087_v11 = vmax.f32 %v2055_v16, 0.0  ;;  %v2058_v55 = vadd.f32 %v2972_v56, %v2004_v41  ;;  %v2005_v2 = vmul.f32 %v2975_v21, %v1634_v52 }
 0x187   :  { %v1637_v42 = vpop.f32.mrf.mxu0 }
 0x188   :  { %v1638_v40 = vadd.f32 %v1637_v42, %v1565_v1  ;;  %2119 = vst [vmem:[#allocation8 + $0xa8] sm:$0xff] %v2087_v11  ;;  %v2090_v6 = vmax.f32 %v2058_v55, 0.0  ;;  %v2059_v51 = vadd.f32 %v2980_v23, %v2005_v2  ;;  %v2008_v12 = vmul.f32 %v2967_v13, %v1636_v8  ;;  %v3050_v13 = vpop.f32.mrf.mxu1 }
 0x18a   :  { %2122 = vst [vmem:[#allocation8 + $0xc0] sm:$0xff] %v2090_v6  ;;  %v2091_v15 = vmax.f32 %v2059_v51, 0.0  ;;  %v2009_v20 = vmul.f32 %v2975_v21, %v1638_v40  ;;  %v2062_v57 = vadd.f32 %v2972_v56, %v2008_v12  ;;  %v3052_v34 = vpop.f32.mrf.mxu1 }
 0x18c   :  { %2123 = vst [vmem:[#allocation8 + $0xc8] sm:$0xff] %v2091_v15  ;;  %v2063_v43 = vadd.f32 %v2980_v23, %v2009_v20  ;;  %v2094_v24 = vmax.f32 %v2062_v57, 0.0  ;;  %v3054_v36 = vpop.f32.mrf.mxu1  ;;  %v1970_v23 = vsub.s32 2, %v2947_v30  ;;  %v3075_v30 = vrot.slane %v2963_v9, %v1974_v18 }
 0x18e   :  { %v2095_v32 = vmax.f32 %v2063_v43, 0.0  ;;  %2126 = vst [vmem:[#allocation8 + $0xe0] sm:$0xff] %v2094_v24  ;;  %v3056_v21 = vpop.f32.mrf.mxu1  ;;  %v3064_v46 = vrot.slane %v2958_v7, %v1970_v23  ;;  %v3068_v28 = vrot.slane %v2963_v9, %v1970_v23 }
 0x190   :  { %2127 = vst [vmem:[#allocation8 + $0xe8] sm:$0xff] %v2095_v32  ;;  %v3058_v56 = vpop.f32.mrf.mxu1 }
 0x1a9   :  { %v1747_v37 = vpop.f32.mrf.mxu0 }
 0x1aa   :  { %v1820_v38 = vpop.f32.mrf.mxu1  ;;  %v1748_v58 = vadd.f32 %v1747_v37, %v2977_v22 }
 0x1ab   :  { %v1749_v59 = vpop.f32.mrf.mxu0 }
 0x1ac   :  { %v1822_v60 = vpop.f32.mrf.mxu1  ;;  %v1821_v39 = vadd.f32 %v1820_v38, %v1748_v58  ;;  %v1750_v4 = vadd.f32 %v1749_v59, %v2985_v45 }
 0x1ad   :  { %v1751_v49 = vpop.f32.mrf.mxu0 }
 0x1ae   :  { %v1824_v5 = vpop.f32.mrf.mxu1  ;;  %v1823_v17 = vadd.f32 %v1822_v60, %v1750_v4  ;;  %v1752_v22 = vadd.f32 %v1751_v49, %v2991_v31  ;;  %v1982_v29 = vmul.f32 %v3064_v46, %v1821_v39 }
 0x1af   :  { %v1753_v26 = vpop.f32.mrf.mxu0 }
 0x1b0   :  { %v1826_v35 = vpop.f32.mrf.mxu1  ;;  %v1825_v61 = vadd.f32 %v1824_v5, %v1752_v22  ;;  %v1754_v45 = vadd.f32 %v1753_v26, %v2998_v54  ;;  %v2036_v48 = vadd.f32 %v3068_v28, %v1982_v29  ;;  %v1983_v52 = vmul.f32 %v3071_v19, %v1823_v17 }
 0x1b1   :  { %v1757_v63 = vpop.f32.mrf.mxu0 }
 0x1b2   :  { %v1830_v50 = vpop.f32.mrf.mxu1  ;;  %v1827_v7 = vadd.f32 %v1826_v35, %v1754_v45  ;;  %v1758_v0 = vadd.f32 %v1757_v63, %v3007_v27  ;;  %v2068_v9 = vmax.f32 %v2036_v48, 0.0  ;;  %v2037_v53 = vadd.f32 %v3075_v30, %v1983_v52 }
 0x1b3   :  { %v1759_v31 = vpop.f32.mrf.mxu0  ;;  %v1986_v62 = vmul.f32 %v3064_v46, %v1825_v61 }
 0x1b4   :  { %v1832_v1 = vpop.f32.mrf.mxu1  ;;  %v1831_v3 = vadd.f32 %v1830_v50, %v1758_v0  ;;  %v1760_v16 = vadd.f32 %v1759_v31, %v3017_v47  ;;  %2100 = vst [vmem:[#allocation8 + $0x10] sm:$0xff] %v2068_v9  ;;  %v2069_v8 = vmax.f32 %v2037_v53, 0.0  ;;  %v1987_v11 = vmul.f32 %v3071_v19, %v1827_v7 }
 0x1b5   :  { %v1761_v54 = vpop.f32.mrf.mxu0  ;;  %v2040_v42 = vadd.f32 %v3068_v28, %v1986_v62 }
 0x1b6   :  { %v1834_v41 = vpop.f32.mrf.mxu1  ;;  %v1762_v27 = vadd.f32 %v1761_v54, %v3025_v44  ;;  %v1833_v55 = vadd.f32 %v1832_v1, %v1760_v16  ;;  %2101 = vst [vmem:[#allocation8 + $0x18] sm:$0xff] %v2069_v8  ;;  %v2041_v51 = vadd.f32 %v3075_v30, %v1987_v11  ;;  %v1990_v15 = vmul.f32 %v3064_v46, %v1831_v3 }
 0x1b7   :  { %v1763_v2 = vpop.f32.mrf.mxu0  ;;  %v2072_v6 = vmax.f32 %v2040_v42, 0.0 }
 0x1b8   :  { %v1836_v40 = vpop.f32.mrf.mxu1  ;;  %v1835_v12 = vadd.f32 %v1834_v41, %v1762_v27  ;;  %v1764_v47 = vadd.f32 %v1763_v2, %v3035_v10  ;;  %v2073_v43 = vmax.f32 %v2041_v51, 0.0  ;;  %v2044_v44 = vadd.f32 %v3068_v28, %v1990_v15 }
 0x1b9   :  { %v1767_v20 = vpop.f32.mrf.mxu0  ;;  %2104 = vst [vmem:[#allocation8 + $0x30] sm:$0xff] %v2072_v6  ;;  %v1991_v23 = vmul.f32 %v3071_v19, %v1833_v55 }
 0x1ba   :  { %v1840_v57 = vpop.f32.mrf.mxu1  ;;  %v1837_v24 = vadd.f32 %v1836_v40, %v1764_v47  ;;  %v1768_v32 = vadd.f32 %v1767_v20, %v3041_v14  ;;  %2105 = vst [vmem:[#allocation8 + $0x38] sm:$0xff] %v2073_v43  ;;  %v1994_v58 = vmul.f32 %v3064_v46, %v1835_v12  ;;  %v2076_v59 = vmax.f32 %v2044_v44, 0.0 }
 0x1bb   :  { %v1769_v37 = vpop.f32.mrf.mxu0  ;;  %v2045_v60 = vadd.f32 %v3075_v30, %v1991_v23 }
 0x1bc   :  { %v1842_v38 = vpop.f32.mrf.mxu1  ;;  %v1841_v18 = vadd.f32 %v1840_v57, %v1768_v32  ;;  %v1770_v10 = vadd.f32 %v1769_v37, %v3046_v25  ;;  %v2048_v49 = vadd.f32 %v3068_v28, %v1994_v58  ;;  %v1995_v14 = vmul.f32 %v3071_v19, %v1837_v24  ;;  %2108 = vst [vmem:[#allocation8 + $0x50] sm:$0xff] %v2076_v59 }
 0x1bd   :  { %v1771_v39 = vpop.f32.mrf.mxu0  ;;  %v2077_v17 = vmax.f32 %v2045_v60, 0.0 }
 0x1be   :  { %v1844_v4 = vpop.f32.mrf.mxu1  ;;  %v1843_v5 = vadd.f32 %v1842_v38, %v1770_v10  ;;  %v1772_v22 = vadd.f32 %v1771_v39, %v3048_v33  ;;  %v2080_v29 = vmax.f32 %v2048_v49, 0.0  ;;  %v2049_v61 = vadd.f32 %v3075_v30, %v1995_v14 }
 0x1bf   :  { %v1773_v26 = vpop.f32.mrf.mxu0  ;;  %v1998_v25 = vmul.f32 %v3064_v46, %v1841_v18  ;;  %2109 = vst [vmem:[#allocation8 + $0x58] sm:$0xff] %v2077_v17 }
 0x1c0   :  { %v1846_v35 = vpop.f32.mrf.mxu1  ;;  %v1845_v45 = vadd.f32 %v1844_v4, %v1772_v22  ;;  %v1774_v63 = vadd.f32 %v1773_v26, %v3050_v13  ;;  %2112 = vst [vmem:[#allocation8 + $0x70] sm:$0xff] %v2080_v29  ;;  %v2081_v52 = vmax.f32 %v2049_v61, 0.0  ;;  %v1999_v0 = vmul.f32 %v3071_v19, %v1843_v5 }
 0x1c1   :  { %v1777_v50 = vpop.f32.mrf.mxu0  ;;  %v2052_v7 = vadd.f32 %v3068_v28, %v1998_v25 }
 0x1c2   :  { %v1850_v48 = vpop.f32.mrf.mxu1  ;;  %v1778_v33 = vadd.f32 %v1777_v50, %v3052_v34  ;;  %v1847_v31 = vadd.f32 %v1846_v35, %v1774_v63  ;;  %2113 = vst [vmem:[#allocation8 + $0x78] sm:$0xff] %v2081_v52  ;;  %v2053_v62 = vadd.f32 %v3075_v30, %v1999_v0  ;;  %v2002_v16 = vmul.f32 %v3064_v46, %v1845_v45 }
 0x1c3   :  { %v1779_v1 = vpop.f32.mrf.mxu0  ;;  %v2084_v53 = vmax.f32 %v2052_v7, 0.0 }
 0x1c4   :  { %v1852_v9 = vpop.f32.mrf.mxu1  ;;  %v1851_v3 = vadd.f32 %v1850_v48, %v1778_v33  ;;  %v1780_v13 = vadd.f32 %v1779_v1, %v3054_v36  ;;  %v2085_v8 = vmax.f32 %v2053_v62, 0.0  ;;  %v2056_v34 = vadd.f32 %v3068_v28, %v2002_v16 }
 0x1c5   :  { %v1781_v54 = vpop.f32.mrf.mxu0  ;;  %2116 = vst [vmem:[#allocation8 + $0x90] sm:$0xff] %v2084_v53  ;;  %v2003_v27 = vmul.f32 %v3071_v19, %v1847_v31 }
 0x1c6   :  { %v1854_v41 = vpop.f32.mrf.mxu1  ;;  %v1853_v42 = vadd.f32 %v1852_v9, %v1780_v13  ;;  %v1782_v11 = vadd.f32 %v1781_v54, %v3056_v21  ;;  %2117 = vst [vmem:[#allocation8 + $0x98] sm:$0xff] %v2085_v8  ;;  %v2006_v2 = vmul.f32 %v3064_v46, %v1851_v3  ;;  %v2088_v6 = vmax.f32 %v2056_v34, 0.0 }
 0x1c7   :  { %v1783_v55 = vpop.f32.mrf.mxu0  ;;  %v2057_v51 = vadd.f32 %v3075_v30, %v2003_v27 }
 0x1c8   :  { %v1855_v40 = vadd.f32 %v1854_v41, %v1782_v11  ;;  %v1784_v36 = vadd.f32 %v1783_v55, %v3058_v56  ;;  %v1856_v12 = vpop.f32.mrf.mxu1  ;;  %v2060_v47 = vadd.f32 %v3068_v28, %v2006_v2  ;;  %v2007_v15 = vmul.f32 %v3071_v19, %v1853_v42  ;;  %2120 = vst [vmem:[#allocation8 + $0xb0] sm:$0xff] %v2088_v6 }
 0x1c9   :  { %v2089_v20 = vmax.f32 %v2057_v51, 0.0 }
 0x1ca   :  { %v1857_v21 = vadd.f32 %v1856_v12, %v1784_v36  ;;  %v2092_v57 = vmax.f32 %v2060_v47, 0.0  ;;  %v2061_v43 = vadd.f32 %v3075_v30, %v2007_v15  ;;  %v2010_v24 = vmul.f32 %v3064_v46, %v1855_v40 }
 0x1cb   :  { %2121 = vst [vmem:[#allocation8 + $0xb8] sm:$0xff] %v2089_v20 }
 0x1cc   :  { %2124 = vst [vmem:[#allocation8 + $0xd0] sm:$0xff] %v2092_v57  ;;  %v2093_v32 = vmax.f32 %v2061_v43, 0.0  ;;  %v2064_v56 = vadd.f32 %v3068_v28, %v2010_v24  ;;  %v2011_v44 = vmul.f32 %v3071_v19, %v1857_v21 }
 0x1ce   :  { %2125 = vst [vmem:[#allocation8 + $0xd8] sm:$0xff] %v2093_v32  ;;  %v2096_v23 = vmax.f32 %v2064_v56, 0.0  ;;  %v2065_v37 = vadd.f32 %v3075_v30, %v2011_v44 }
 0x1d0   :  { %2128 = vst [vmem:[#allocation8 + $0xf0] sm:$0xff] %v2096_v23  ;;  %v2097_v38 = vmax.f32 %v2065_v37, 0.0 }
 0x1d2   :  { %2129 = vst [vmem:[#allocation8 + $0xf8] sm:$0xff] %v2097_v38 }
 0x1d3   :  { %2770 = shalt.err (!%p2767_p5)
}
 0x1d4   :  { %s2793_s9 = smov 512   ;;  %s2794_s10 = smov 32  }
 0x1d5   :  { %2141 = dma.vmem_to_hbm [thread:$0]  %s2136_s7, 4096, %s3129_s4, [#allocation4], %s2793_s9, %s2793_s9, %s2794_s10  }
 0x1d6   :  { %2783 = dma.done.wait [#allocation4], 4096  }
 0x1d7   :  { %2784 = vsyncadd [#allocation4], 4294963200 }
 0x1d8   :  { %2145 = vsyncpa [#allocation3], 1 }
 0x1d9   :  { %2146 = vsyncpa [#allocation6], 1 }
 0x1da   :  { %2147 = vsyncpa [#allocation4], 1 }

</bundles_post_ra>
